<compile_context>
chip_gen: v5e
topology: v5e:2x2
jax: 0.10.0
libtpu: 0.0.40
codegen_flags: <defaults>
</compile_context>

<pallas_src>
import functools

import jax
import jax.numpy as jnp
from jax.experimental import pallas as pl
from jax.experimental.pallas import tpu as pltpu


# ---------------------------------------------------------------------------
# Kernel
# ---------------------------------------------------------------------------
def _bottleneck_kernel(x_main_ref, x_top_ref, x_bot_ref,
                       w1_ref, b1_ref, w2_ref, b2_ref, w3_ref, b3_ref,
                       ws_ref, bs_ref, out_ref, *,
                       stride, has_shortcut, W_real, Wp):
    f32 = jnp.float32
    cdtype = x_main_ref.dtype
    Cin_p = x_main_ref.shape[2]
    P_p = w1_ref.shape[1]
    M_in = x_main_ref.shape[1]            # TH_in * Wp  (flattened rows)
    TH_in = M_in // Wp
    TH_out = TH_in // stride
    Wo_p = Wp // stride
    M_h1 = M_in + 2 * Wp                  # conv1 rows incl. the two halo rows
    M_out = TH_out * Wo_p

    i_blk = pl.program_id(1)
    nb = pl.num_programs(1)

    # ---- conv1 (1x1, BN folded) + ReLU; halo rows computed separately ------
    w1 = w1_ref[...]
    b1 = b1_ref[...]

    def conv1(x2d):
        return jnp.maximum(jnp.dot(x2d, w1, preferred_element_type=f32) + b1, 0.0)

    # halo rows become conv2's zero padding at the image borders (1-row select)
    h_top = jnp.where(i_blk > 0, conv1(x_top_ref[0]), 0.0)
    h_bot = jnp.where(i_blk < nb - 1, conv1(x_bot_ref[0]), 0.0)
    h1 = jnp.concatenate([h_top, conv1(x_main_ref[0]), h_bot], axis=0)  # (M_h1, P_p) f32

    # ---- conv2 (3x3, stride, pad=1): 9 accumulated MXU matmuls -------------
    # kx taps via XLU sublane roll on the flattened row*W axis; wrapped /
    # zero-padding columns are masked (always correct, also with W padding).
    col = jax.lax.broadcasted_iota(jnp.int32, (TH_in + 2, Wp, 1), 1).reshape(M_h1, 1)
    v_m1 = jnp.where(col == 0, 0.0, pltpu.roll(h1, 1, axis=0))                  # dx = -1
    v_p1 = jnp.where(col == W_real - 1, 0.0, pltpu.roll(h1, M_h1 - 1, axis=0))  # dx = +1
    variants = [v.astype(cdtype) for v in (v_m1, h1, v_p1)]                     # kx = 0,1,2

    def tap(ky, kx):
        v = variants[kx]
        if stride == 1:
            return v[ky * Wp: ky * Wp + M_out, :]          # sublane-aligned static slice
        # TODO(synk): stride-2 decimation is an in-vreg strided slice (relayout);
        #             it cannot be pushed into the BlockSpec because h1 is
        #             produced inside the kernel.
        v3 = v.reshape(TH_in + 2, Wp, P_p)
        return v3[ky:ky + TH_in - 1:stride, ::stride, :].reshape(M_out, P_p)

    acc = jnp.zeros((M_out, P_p), f32)
    for ky in range(3):
        for kx in range(3):
            acc += jnp.dot(tap(ky, kx), w2_ref[ky * 3 + kx],
                           preferred_element_type=f32)
    h2 = jnp.maximum(acc + b2_ref[...], 0.0).astype(cdtype)

    # ---- shortcut (first, to keep the f32 epilogue live ranges short) ------
    if has_shortcut:
        if stride == 1:
            xs = x_main_ref[0]
        else:
            xs = x_main_ref[0].reshape(TH_in, Wp, Cin_p)[::stride, ::stride, :]
            xs = xs.reshape(M_out, Cin_p)
        sc = jnp.dot(xs, ws_ref[...], preferred_element_type=f32) + bs_ref[...]
    else:  # identity: stride == 1 and Cin_p == Cout_p
        sc = x_main_ref[0].astype(f32)

    # ---- conv3 (1x1, BN folded) + residual + ReLU, store in compute dtype --
    out = jnp.dot(h2, w3_ref[...], preferred_element_type=f32) + b3_ref[...]
    out_ref[0] = jnp.maximum(out + sc, 0.0).astype(out_ref.dtype)


# ---------------------------------------------------------------------------
# Wrapper
# ---------------------------------------------------------------------------
def _round_up(x, m):
    return (x + m - 1) // m * m


def _bn_scale_bias(bn, eps=1e-5):
    gamma, beta, mean, var = bn
    scale = gamma / jnp.sqrt(var + eps)
    return scale, beta - mean * scale


def _pad2(a, r, c):
    return jnp.pad(a, ((0, r - a.shape[0]), (0, c - a.shape[1])))


def bottleneck_forward(x_nchw, params, stride=1, row_tile=None,
                       compute_dtype=jnp.bfloat16, lane=128,
                       vmem_budget_bytes=40 * 1024 * 1024):
    x = jnp.transpose(x_nchw, (0, 2, 3, 1))                  # NCHW -> NHWC
    N, H, W, Cin = x.shape
    P = params["conv1_w"].shape[0]
    Cout = params["conv3_w"].shape[0]
    assert H % stride == 0 and W % stride == 0
    Ho, Wo = H // stride, W // stride
    has_shortcut = (stride != 1) or (Cin != Cout)

    # lane-dense channels, sublane-dense width
    Cin_p, P_p, Cout_p = (_round_up(c, lane) for c in (Cin, P, Cout))
    Wp = _round_up(W, 8)
    Wo_p = Wp // stride

    # ---- fold BN scales into conv weights; biases stay f32 -----------------
    s1, b1 = _bn_scale_bias(params["bn1"])
    s2, b2 = _bn_scale_bias(params["bn2"])
    s3, b3 = _bn_scale_bias(params["bn3"])
    w1 = _pad2(params["conv1_w"][:, :, 0, 0].T * s1[None, :], Cin_p, P_p)
    w3 = _pad2(params["conv3_w"][:, :, 0, 0].T * s3[None, :], P_p, Cout_p)
    w2 = jnp.stack(
        [_pad2(params["conv2_w"][:, :, ky, kx].T * s2[None, :], P_p, P_p)
         for ky in range(3) for kx in range(3)], axis=0)     # (9, P_p, P_p)
    b1 = _pad2(b1.reshape(1, -1), 1, P_p).astype(jnp.float32)
    b2 = _pad2(b2.reshape(1, -1), 1, P_p).astype(jnp.float32)
    b3 = _pad2(b3.reshape(1, -1), 1, Cout_p).astype(jnp.float32)
    if has_shortcut:
        ss, bs = _bn_scale_bias(params["sc_bn"])
        ws = _pad2(params["sc_conv_w"][:, :, 0, 0].T * ss[None, :], Cin_p, Cout_p)
        bs = _pad2(bs.reshape(1, -1), 1, Cout_p).astype(jnp.float32)
    else:
        ws = jnp.zeros((Cin_p, Cout_p), jnp.float32)
        bs = jnp.zeros((1, Cout_p), jnp.float32)

    cd = compute_dtype
    isz = jnp.dtype(cd).itemsize
    xp = jnp.pad(x, ((0, 0), (0, 0), (0, Wp - W), (0, Cin_p - Cin))).astype(cd)
    xp = xp.reshape(N, H * Wp, Cin_p)                        # flattened spatial
    w1, w2, w3, ws = (w.astype(cd) for w in (w1, w2, w3, ws))

    # ---- output-row tiling under a per-block VMEM budget --------------------
    def vmem_estimate(th_out):
        th_in = th_out * stride
        m_h1 = (th_in + 2) * Wp
        m_out = th_out * Wo_p
        inputs = 2 * (th_in * Wp + 2 * Wp) * Cin_p * isz          # double-buffered
        outputs = 2 * m_out * Cout_p * isz
        weights = (Cin_p * P_p + 9 * P_p * P_p + P_p * Cout_p
                   + Cin_p * Cout_p) * isz + (2 * P_p + 2 * Cout_p) * 4
        inter = m_h1 * P_p * (2 * 4 + 3 * isz) + m_out * P_p * 4 \
            + 2 * m_out * Cout_p * 4
        return inputs + outputs + weights + inter

    target = row_tile if row_tile is not None else max(1, 1024 // max(Wo_p, 1))
    divisors = [d for d in range(1, Ho + 1) if Ho % d == 0]
    ok = [d for d in divisors if (d * Wo_p) % 8 == 0 or d == Ho]
    cand = [d for d in ok if d <= target and vmem_estimate(d) <= vmem_budget_bytes]
    TH_out = max(cand) if cand else min(ok)
    TH_in = TH_out * stride
    nb = Ho // TH_out

    flops = int(2 * N * Ho * Wo_p * (Cin_p * P_p + 9 * P_p * P_p + P_p * Cout_p
                                     + (Cin_p * Cout_p if has_shortcut else 0)))
    bytes_acc = int(N * (H + 2 * nb) * Wp * Cin_p * isz
                    + N * Ho * Wo_p * Cout_p * isz
                    + (Cin_p * P_p + 9 * P_p * P_p + P_p * Cout_p
                       + Cin_p * Cout_p) * isz
                    + (2 * P_p + 2 * Cout_p) * 4)
    vmem_limit_bytes = int(min(64 * 2**20, max(16 * 2**20, 2 * vmem_estimate(TH_out))))

    kernel = functools.partial(_bottleneck_kernel, stride=stride,
                               has_shortcut=has_shortcut, W_real=W, Wp=Wp)

    out_flat = pl.pallas_call(
        kernel,
        out_shape=jax.ShapeDtypeStruct((N, Ho * Wo_p, Cout_p), cd),
        grid=(N, nb),
        in_specs=[
            # main rows of this output-row block (flattened spatial)
            pl.BlockSpec((1, TH_in * Wp, Cin_p), lambda n, i: (n, i, 0)),
            # 1-row top / bottom halos (clamped at the border, zeroed in-kernel)
            pl.BlockSpec((1, Wp, Cin_p),
                         lambda n, i: (n, jnp.maximum(i * TH_in - 1, 0), 0)),
            pl.BlockSpec((1, Wp, Cin_p),
                         lambda n, i: (n, jnp.minimum((i + 1) * TH_in, H - 1), 0)),
            # weights / biases (resident across the grid)
            pl.BlockSpec((Cin_p, P_p), lambda n, i: (0, 0)),
            pl.BlockSpec((1, P_p), lambda n, i: (0, 0)),
            pl.BlockSpec((9, P_p, P_p), lambda n, i: (0, 0, 0)),
            pl.BlockSpec((1, P_p), lambda n, i: (0, 0)),
            pl.BlockSpec((P_p, Cout_p), lambda n, i: (0, 0)),
            pl.BlockSpec((1, Cout_p), lambda n, i: (0, 0)),
            pl.BlockSpec((Cin_p, Cout_p), lambda n, i: (0, 0)),
            pl.BlockSpec((1, Cout_p), lambda n, i: (0, 0)),
        ],
        out_specs=pl.BlockSpec((1, TH_out * Wo_p, Cout_p), lambda n, i: (n, i, 0)),
        compiler_params=pltpu.CompilerParams(
            dimension_semantics=("parallel", "parallel"),
            vmem_limit_bytes=vmem_limit_bytes),
        cost_estimate=pl.CostEstimate(flops=flops, transcendentals=0,
                                      bytes_accessed=bytes_acc),
    )(xp, xp, xp, w1, b1, w2, b2, w3, b3, ws, bs)

    out = out_flat.reshape(N, Ho, Wo_p, Cout_p)[:, :, :Wo, :Cout]
    return jnp.transpose(out, (0, 3, 1, 2)).astype(x_nchw.dtype)   # NHWC -> NCHW


# ---------------------------------------------------------------------------
# Parameter init + pure-JAX reference (eval-mode BN), mirrors PyTorch forward
# ---------------------------------------------------------------------------
def init_params(key, in_planes, planes, expansion=4, stride=1):
    cout = expansion * planes
    keys = jax.random.split(key, 8)

    def bn_params(k, c):
        k1, k2, k3, k4 = jax.random.split(k, 4)
        gamma = jax.random.uniform(k1, (c,), jnp.float32, 0.5, 1.5)
        beta = jax.random.normal(k2, (c,), jnp.float32) * 0.1
        mean = jax.random.normal(k3, (c,), jnp.float32) * 0.1
        var = jax.random.uniform(k4, (c,), jnp.float32, 0.5, 1.5)
        return (gamma, beta, mean, var)

    p = {
        "conv1_w": jax.random.normal(keys[0], (planes, in_planes, 1, 1), jnp.float32) * 0.2,
        "bn1": bn_params(keys[1], planes),
        "conv2_w": jax.random.normal(keys[2], (planes, planes, 3, 3), jnp.float32) * 0.2,
        "bn2": bn_params(keys[3], planes),
        "conv3_w": jax.random.normal(keys[4], (cout, planes, 1, 1), jnp.float32) * 0.2,
        "bn3": bn_params(keys[5], cout),
    }
    if stride != 1 or in_planes != cout:
        p["sc_conv_w"] = jax.random.normal(keys[6], (cout, in_planes, 1, 1), jnp.float32) * 0.2
        p["sc_bn"] = bn_params(keys[7], cout)
    return p


def ref_forward(x_nchw, params, stride=1):
    def conv(x, w, s=1, pad=0):
        return jax.lax.conv_general_dilated(
            x, w, (s, s), [(pad, pad), (pad, pad)],
            dimension_numbers=("NCHW", "OIHW", "NCHW"))

    def bn(x, prm, eps=1e-5):
        g, b, m, v = (a.reshape(1, -1, 1, 1) for a in prm)
        return (x - m) / jnp.sqrt(v + eps) * g + b

    out = jax.nn.relu(bn(conv(x_nchw, params["conv1_w"]), params["bn1"]))
    out = jax.nn.relu(bn(conv(out, params["conv2_w"], stride, 1), params["bn2"]))
    out = bn(conv(out, params["conv3_w"]), params["bn3"])
    if "sc_conv_w" in params:
        sc = bn(conv(x_nchw, params["sc_conv_w"], stride), params["sc_bn"])
    else:
        sc = x_nchw
    return jax.nn.relu(out + sc)


# ---------------------------------------------------------------------------
if __name__ == "__main__":
    key = jax.random.PRNGKey(0)
    configs = [
        dict(in_planes=4, planes=4, stride=1),    # conv shortcut (Cin != Cout)
        dict(in_planes=16, planes=4, stride=1),   # identity shortcut
    ]
    for cfg in configs:
        kx, kp, key = jax.random.split(key, 3)
        x = jax.random.normal(kx, (2, cfg["in_planes"], 16, 16), jnp.float32)
        params = init_params(kp, cfg["in_planes"], cfg["planes"],
                             stride=cfg["stride"])
        ref = ref_forward(x, params, stride=cfg["stride"])

        # exact-math check (f32 operands), multi-row-block grid exercises halos
        out32 = bottleneck_forward(x, params, stride=cfg["stride"],
                                   row_tile=4, compute_dtype=jnp.float32)
        out32 = jax.block_until_ready(out32)
        assert out32.shape == ref.shape, (out32.shape, ref.shape)
        assert jnp.allclose(out32, ref, atol=1e-3, rtol=1e-3), \
            float(jnp.max(jnp.abs(out32 - ref)))

        # mixed-precision path: bf16 operands/output, f32 accumulation,
        # default (single-block) row tiling exercises the nb==1 border path
        outbf = bottleneck_forward(x, params, stride=cfg["stride"],
                                   compute_dtype=jnp.bfloat16)
        outbf = jax.block_until_ready(outbf)
        assert jnp.allclose(outbf, ref, atol=2e-1, rtol=5e-2), \
            float(jnp.max(jnp.abs(outbf - ref)))

    print("KERNEL_OK")
</pallas_src>

<mosaic_0001>
module attributes {stable_mosaic.version = 11 : i64} {
  func.func @_bottleneck_kernel(%arg0: i32, %arg1: i32, %arg2: memref<1x64x128xf32, #tpu.memory_space<vmem>>, %arg3: memref<1x16x128xf32, #tpu.memory_space<vmem>>, %arg4: memref<1x16x128xf32, #tpu.memory_space<vmem>>, %arg5: memref<128x128xf32, #tpu.memory_space<vmem>>, %arg6: memref<1x128xf32, #tpu.memory_space<vmem>>, %arg7: memref<9x128x128xf32, #tpu.memory_space<vmem>>, %arg8: memref<1x128xf32, #tpu.memory_space<vmem>>, %arg9: memref<128x128xf32, #tpu.memory_space<vmem>>, %arg10: memref<1x128xf32, #tpu.memory_space<vmem>>, %arg11: memref<128x128xf32, #tpu.memory_space<vmem>>, %arg12: memref<1x128xf32, #tpu.memory_space<vmem>>, %arg13: memref<1x64x128xf32, #tpu.memory_space<vmem>>) attributes {dimension_semantics = [#tpu.dimension_semantics<parallel>, #tpu.dimension_semantics<parallel>], iteration_bounds = array<i64: 2, 4>, scalar_prefetch = 0 : i64, scratch_operands = 0 : i64, tpu.core_type = #tpu.core_type<tc>, window_params = [{transform_indices = @transform_0, window_bounds = array<i64: 1, 64, 128>}, {transform_indices = @transform_1, window_bounds = array<i64: 1, 16, 128>}, {transform_indices = @transform_2, window_bounds = array<i64: 1, 16, 128>}, {pipeline_mode = #tpu.pipeline_mode<synchronous>, transform_indices = @transform_3, window_bounds = array<i64: 128, 128>}, {pipeline_mode = #tpu.pipeline_mode<synchronous>, transform_indices = @transform_4, window_bounds = array<i64: 1, 128>}, {pipeline_mode = #tpu.pipeline_mode<synchronous>, transform_indices = @transform_5, window_bounds = array<i64: 9, 128, 128>}, {pipeline_mode = #tpu.pipeline_mode<synchronous>, transform_indices = @transform_6, window_bounds = array<i64: 1, 128>}, {pipeline_mode = #tpu.pipeline_mode<synchronous>, transform_indices = @transform_7, window_bounds = array<i64: 128, 128>}, {pipeline_mode = #tpu.pipeline_mode<synchronous>, transform_indices = @transform_8, window_bounds = array<i64: 1, 128>}, {pipeline_mode = #tpu.pipeline_mode<synchronous>, transform_indices = @transform_9, window_bounds = array<i64: 128, 128>}, {pipeline_mode = #tpu.pipeline_mode<synchronous>, transform_indices = @transform_10, window_bounds = array<i64: 1, 128>}, {transform_indices = @transform_11, window_bounds = array<i64: 1, 64, 128>}]} {
    %c0 = arith.constant 0 : index
    %c0_0 = arith.constant 0 : index
    %0 = vector.load %arg5[%c0, %c0_0] : memref<128x128xf32, #tpu.memory_space<vmem>>, vector<128x128xf32>
    %c0_1 = arith.constant 0 : index
    %c0_2 = arith.constant 0 : index
    %1 = vector.load %arg6[%c0_1, %c0_2] : memref<1x128xf32, #tpu.memory_space<vmem>>, vector<1x128xf32>
    %c0_i32 = arith.constant 0 : i32
    %2 = arith.cmpi sgt, %arg1, %c0_i32 : i32
    %c0_3 = arith.constant 0 : index
    %c0_4 = arith.constant 0 : index
    %c0_5 = arith.constant 0 : index
    %3 = vector.load %arg3[%c0_3, %c0_4, %c0_5] : memref<1x16x128xf32, #tpu.memory_space<vmem>>, vector<1x16x128xf32>
    %4 = vector.shape_cast %3 : vector<1x16x128xf32> to vector<16x128xf32>
    %cst = arith.constant dense<0.000000e+00> : vector<16x128xf32>
    %5 = tpu.matmul %4, %0, %cst {dimension_numbers = #tpu.dot_dimension_numbers<[1], [0], [0], [1], [0, 0, 1, 1], [], []>} : vector<16x128xf32>, vector<128x128xf32>, vector<16x128xf32> -> vector<16x128xf32>
    %6 = vector.broadcast %1 : vector<1x128xf32> to vector<16x128xf32>
    %7 = arith.addf %5, %6 : vector<16x128xf32>
    %cst_6 = arith.constant 0.000000e+00 : f32
    %8 = vector.broadcast %cst_6 : f32 to vector<16x128xf32>
    %9 = arith.maximumf %7, %8 : vector<16x128xf32>
    %cst_7 = arith.constant 0.000000e+00 : f32
    %10 = vector.broadcast %cst_7 : f32 to vector<16x128xf32>
    %11 = arith.select %2, %9, %10 : vector<16x128xf32>
    %c3_i32 = arith.constant 3 : i32
    %12 = arith.cmpi slt, %arg1, %c3_i32 : i32
    %c0_8 = arith.constant 0 : index
    %c0_9 = arith.constant 0 : index
    %c0_10 = arith.constant 0 : index
    %13 = vector.load %arg4[%c0_8, %c0_9, %c0_10] : memref<1x16x128xf32, #tpu.memory_space<vmem>>, vector<1x16x128xf32>
    %14 = vector.shape_cast %13 : vector<1x16x128xf32> to vector<16x128xf32>
    %cst_11 = arith.constant dense<0.000000e+00> : vector<16x128xf32>
    %15 = tpu.matmul %14, %0, %cst_11 {dimension_numbers = #tpu.dot_dimension_numbers<[1], [0], [0], [1], [0, 0, 1, 1], [], []>} : vector<16x128xf32>, vector<128x128xf32>, vector<16x128xf32> -> vector<16x128xf32>
    %16 = vector.broadcast %1 : vector<1x128xf32> to vector<16x128xf32>
    %17 = arith.addf %15, %16 : vector<16x128xf32>
    %cst_12 = arith.constant 0.000000e+00 : f32
    %18 = vector.broadcast %cst_12 : f32 to vector<16x128xf32>
    %19 = arith.maximumf %17, %18 : vector<16x128xf32>
    %cst_13 = arith.constant 0.000000e+00 : f32
    %20 = vector.broadcast %cst_13 : f32 to vector<16x128xf32>
    %21 = arith.select %12, %19, %20 : vector<16x128xf32>
    %c0_14 = arith.constant 0 : index
    %c0_15 = arith.constant 0 : index
    %c0_16 = arith.constant 0 : index
    %22 = vector.load %arg2[%c0_14, %c0_15, %c0_16] : memref<1x64x128xf32, #tpu.memory_space<vmem>>, vector<1x64x128xf32>
    %23 = vector.shape_cast %22 : vector<1x64x128xf32> to vector<64x128xf32>
    %cst_17 = arith.constant dense<0.000000e+00> : vector<64x128xf32>
    %24 = tpu.matmul %23, %0, %cst_17 {dimension_numbers = #tpu.dot_dimension_numbers<[1], [0], [0], [1], [0, 0, 1, 1], [], []>} : vector<64x128xf32>, vector<128x128xf32>, vector<64x128xf32> -> vector<64x128xf32>
    %25 = vector.broadcast %1 : vector<1x128xf32> to vector<64x128xf32>
    %26 = arith.addf %24, %25 : vector<64x128xf32>
    %cst_18 = arith.constant 0.000000e+00 : f32
    %27 = vector.broadcast %cst_18 : f32 to vector<64x128xf32>
    %28 = arith.maximumf %26, %27 : vector<64x128xf32>
    %29 = tpu.concatenate %11, %28, %21 in 0 : vector<16x128xf32>, vector<64x128xf32>, vector<16x128xf32> -> vector<96x128xf32>
    %30 = tpu.iota {dimensions = array<i32: 1>} : vector<6x16x1xi32>
    %31 = vector.shape_cast %30 : vector<6x16x1xi32> to vector<96x1xi32>
    %c0_i32_19 = arith.constant 0 : i32
    %32 = vector.broadcast %c0_i32_19 : i32 to vector<96x1xi32>
    %33 = arith.cmpi eq, %31, %32 : vector<96x1xi32>
    %c1_i32 = arith.constant 1 : i32
    %34 = tpu.dynamic_rotate %29 by %c1_i32 dim 0 : vector<96x128xf32>, i32 -> vector<96x128xf32>
    %cst_20 = arith.constant 0.000000e+00 : f32
    %35 = vector.shape_cast %33 : vector<96x1xi1> to vector<96x1xi1>
    %36 = vector.broadcast %35 : vector<96x1xi1> to vector<96x128xi1>
    %37 = vector.broadcast %cst_20 : f32 to vector<96x128xf32>
    %38 = arith.select %36, %37, %34 : vector<96x128xi1>, vector<96x128xf32>
    %c15_i32 = arith.constant 15 : i32
    %39 = vector.broadcast %c15_i32 : i32 to vector<96x1xi32>
    %40 = arith.cmpi eq, %31, %39 : vector<96x1xi32>
    %c95_i32 = arith.constant 95 : i32
    %41 = tpu.dynamic_rotate %29 by %c95_i32 dim 0 : vector<96x128xf32>, i32 -> vector<96x128xf32>
    %cst_21 = arith.constant 0.000000e+00 : f32
    %42 = vector.shape_cast %40 : vector<96x1xi1> to vector<96x1xi1>
    %43 = vector.broadcast %42 : vector<96x1xi1> to vector<96x128xi1>
    %44 = vector.broadcast %cst_21 : f32 to vector<96x128xf32>
    %45 = arith.select %43, %44, %41 : vector<96x128xi1>, vector<96x128xf32>
    %cst_22 = arith.constant 0.000000e+00 : f32
    %46 = vector.broadcast %cst_22 : f32 to vector<64x128xf32>
    %47 = vector.extract_strided_slice %38 {offsets = [0, 0], sizes = [64, 128], strides = [1, 1]} : vector<96x128xf32> to vector<64x128xf32>
    %c0_23 = arith.constant 0 : index
    %c0_24 = arith.constant 0 : index
    %c0_25 = arith.constant 0 : index
    %48 = vector.load %arg7[%c0_23, %c0_24, %c0_25] : memref<9x128x128xf32, #tpu.memory_space<vmem>>, vector<1x128x128xf32>
    %49 = vector.shape_cast %48 : vector<1x128x128xf32> to vector<128x128xf32>
    %cst_26 = arith.constant dense<0.000000e+00> : vector<64x128xf32>
    %50 = tpu.matmul %47, %49, %cst_26 {dimension_numbers = #tpu.dot_dimension_numbers<[1], [0], [0], [1], [0, 0, 1, 1], [], []>} : vector<64x128xf32>, vector<128x128xf32>, vector<64x128xf32> -> vector<64x128xf32>
    %51 = arith.addf %46, %50 : vector<64x128xf32>
    %52 = vector.extract_strided_slice %29 {offsets = [0, 0], sizes = [64, 128], strides = [1, 1]} : vector<96x128xf32> to vector<64x128xf32>
    %c1 = arith.constant 1 : index
    %c0_27 = arith.constant 0 : index
    %c0_28 = arith.constant 0 : index
    %53 = vector.load %arg7[%c1, %c0_27, %c0_28] : memref<9x128x128xf32, #tpu.memory_space<vmem>>, vector<1x128x128xf32>
    %54 = vector.shape_cast %53 : vector<1x128x128xf32> to vector<128x128xf32>
    %cst_29 = arith.constant dense<0.000000e+00> : vector<64x128xf32>
    %55 = tpu.matmul %52, %54, %cst_29 {dimension_numbers = #tpu.dot_dimension_numbers<[1], [0], [0], [1], [0, 0, 1, 1], [], []>} : vector<64x128xf32>, vector<128x128xf32>, vector<64x128xf32> -> vector<64x128xf32>
    %56 = arith.addf %51, %55 : vector<64x128xf32>
    %57 = vector.extract_strided_slice %45 {offsets = [0, 0], sizes = [64, 128], strides = [1, 1]} : vector<96x128xf32> to vector<64x128xf32>
    %c2 = arith.constant 2 : index
    %c0_30 = arith.constant 0 : index
    %c0_31 = arith.constant 0 : index
    %58 = vector.load %arg7[%c2, %c0_30, %c0_31] : memref<9x128x128xf32, #tpu.memory_space<vmem>>, vector<1x128x128xf32>
    %59 = vector.shape_cast %58 : vector<1x128x128xf32> to vector<128x128xf32>
    %cst_32 = arith.constant dense<0.000000e+00> : vector<64x128xf32>
    %60 = tpu.matmul %57, %59, %cst_32 {dimension_numbers = #tpu.dot_dimension_numbers<[1], [0], [0], [1], [0, 0, 1, 1], [], []>} : vector<64x128xf32>, vector<128x128xf32>, vector<64x128xf32> -> vector<64x128xf32>
    %61 = arith.addf %56, %60 : vector<64x128xf32>
    %62 = vector.extract_strided_slice %38 {offsets = [16, 0], sizes = [64, 128], strides = [1, 1]} : vector<96x128xf32> to vector<64x128xf32>
    %c3 = arith.constant 3 : index
    %c0_33 = arith.constant 0 : index
    %c0_34 = arith.constant 0 : index
    %63 = vector.load %arg7[%c3, %c0_33, %c0_34] : memref<9x128x128xf32, #tpu.memory_space<vmem>>, vector<1x128x128xf32>
    %64 = vector.shape_cast %63 : vector<1x128x128xf32> to vector<128x128xf32>
    %cst_35 = arith.constant dense<0.000000e+00> : vector<64x128xf32>
    %65 = tpu.matmul %62, %64, %cst_35 {dimension_numbers = #tpu.dot_dimension_numbers<[1], [0], [0], [1], [0, 0, 1, 1], [], []>} : vector<64x128xf32>, vector<128x128xf32>, vector<64x128xf32> -> vector<64x128xf32>
    %66 = arith.addf %61, %65 : vector<64x128xf32>
    %67 = vector.extract_strided_slice %29 {offsets = [16, 0], sizes = [64, 128], strides = [1, 1]} : vector<96x128xf32> to vector<64x128xf32>
    %c4 = arith.constant 4 : index
    %c0_36 = arith.constant 0 : index
    %c0_37 = arith.constant 0 : index
    %68 = vector.load %arg7[%c4, %c0_36, %c0_37] : memref<9x128x128xf32, #tpu.memory_space<vmem>>, vector<1x128x128xf32>
    %69 = vector.shape_cast %68 : vector<1x128x128xf32> to vector<128x128xf32>
    %cst_38 = arith.constant dense<0.000000e+00> : vector<64x128xf32>
    %70 = tpu.matmul %67, %69, %cst_38 {dimension_numbers = #tpu.dot_dimension_numbers<[1], [0], [0], [1], [0, 0, 1, 1], [], []>} : vector<64x128xf32>, vector<128x128xf32>, vector<64x128xf32> -> vector<64x128xf32>
    %71 = arith.addf %66, %70 : vector<64x128xf32>
    %72 = vector.extract_strided_slice %45 {offsets = [16, 0], sizes = [64, 128], strides = [1, 1]} : vector<96x128xf32> to vector<64x128xf32>
    %c5 = arith.constant 5 : index
    %c0_39 = arith.constant 0 : index
    %c0_40 = arith.constant 0 : index
    %73 = vector.load %arg7[%c5, %c0_39, %c0_40] : memref<9x128x128xf32, #tpu.memory_space<vmem>>, vector<1x128x128xf32>
    %74 = vector.shape_cast %73 : vector<1x128x128xf32> to vector<128x128xf32>
    %cst_41 = arith.constant dense<0.000000e+00> : vector<64x128xf32>
    %75 = tpu.matmul %72, %74, %cst_41 {dimension_numbers = #tpu.dot_dimension_numbers<[1], [0], [0], [1], [0, 0, 1, 1], [], []>} : vector<64x128xf32>, vector<128x128xf32>, vector<64x128xf32> -> vector<64x128xf32>
    %76 = arith.addf %71, %75 : vector<64x128xf32>
    %77 = vector.extract_strided_slice %38 {offsets = [32, 0], sizes = [64, 128], strides = [1, 1]} : vector<96x128xf32> to vector<64x128xf32>
    %c6 = arith.constant 6 : index
    %c0_42 = arith.constant 0 : index
    %c0_43 = arith.constant 0 : index
    %78 = vector.load %arg7[%c6, %c0_42, %c0_43] : memref<9x128x128xf32, #tpu.memory_space<vmem>>, vector<1x128x128xf32>
    %79 = vector.shape_cast %78 : vector<1x128x128xf32> to vector<128x128xf32>
    %cst_44 = arith.constant dense<0.000000e+00> : vector<64x128xf32>
    %80 = tpu.matmul %77, %79, %cst_44 {dimension_numbers = #tpu.dot_dimension_numbers<[1], [0], [0], [1], [0, 0, 1, 1], [], []>} : vector<64x128xf32>, vector<128x128xf32>, vector<64x128xf32> -> vector<64x128xf32>
    %81 = arith.addf %76, %80 : vector<64x128xf32>
    %82 = vector.extract_strided_slice %29 {offsets = [32, 0], sizes = [64, 128], strides = [1, 1]} : vector<96x128xf32> to vector<64x128xf32>
    %c7 = arith.constant 7 : index
    %c0_45 = arith.constant 0 : index
    %c0_46 = arith.constant 0 : index
    %83 = vector.load %arg7[%c7, %c0_45, %c0_46] : memref<9x128x128xf32, #tpu.memory_space<vmem>>, vector<1x128x128xf32>
    %84 = vector.shape_cast %83 : vector<1x128x128xf32> to vector<128x128xf32>
    %cst_47 = arith.constant dense<0.000000e+00> : vector<64x128xf32>
    %85 = tpu.matmul %82, %84, %cst_47 {dimension_numbers = #tpu.dot_dimension_numbers<[1], [0], [0], [1], [0, 0, 1, 1], [], []>} : vector<64x128xf32>, vector<128x128xf32>, vector<64x128xf32> -> vector<64x128xf32>
    %86 = arith.addf %81, %85 : vector<64x128xf32>
    %87 = vector.extract_strided_slice %45 {offsets = [32, 0], sizes = [64, 128], strides = [1, 1]} : vector<96x128xf32> to vector<64x128xf32>
    %c8 = arith.constant 8 : index
    %c0_48 = arith.constant 0 : index
    %c0_49 = arith.constant 0 : index
    %88 = vector.load %arg7[%c8, %c0_48, %c0_49] : memref<9x128x128xf32, #tpu.memory_space<vmem>>, vector<1x128x128xf32>
    %89 = vector.shape_cast %88 : vector<1x128x128xf32> to vector<128x128xf32>
    %cst_50 = arith.constant dense<0.000000e+00> : vector<64x128xf32>
    %90 = tpu.matmul %87, %89, %cst_50 {dimension_numbers = #tpu.dot_dimension_numbers<[1], [0], [0], [1], [0, 0, 1, 1], [], []>} : vector<64x128xf32>, vector<128x128xf32>, vector<64x128xf32> -> vector<64x128xf32>
    %91 = arith.addf %86, %90 : vector<64x128xf32>
    %c0_51 = arith.constant 0 : index
    %c0_52 = arith.constant 0 : index
    %92 = vector.load %arg8[%c0_51, %c0_52] : memref<1x128xf32, #tpu.memory_space<vmem>>, vector<1x128xf32>
    %93 = vector.broadcast %92 : vector<1x128xf32> to vector<64x128xf32>
    %94 = arith.addf %91, %93 : vector<64x128xf32>
    %cst_53 = arith.constant 0.000000e+00 : f32
    %95 = vector.broadcast %cst_53 : f32 to vector<64x128xf32>
    %96 = arith.maximumf %94, %95 : vector<64x128xf32>
    %c0_54 = arith.constant 0 : index
    %c0_55 = arith.constant 0 : index
    %c0_56 = arith.constant 0 : index
    %97 = vector.load %arg2[%c0_54, %c0_55, %c0_56] : memref<1x64x128xf32, #tpu.memory_space<vmem>>, vector<1x64x128xf32>
    %98 = vector.shape_cast %97 : vector<1x64x128xf32> to vector<64x128xf32>
    %c0_57 = arith.constant 0 : index
    %c0_58 = arith.constant 0 : index
    %99 = vector.load %arg11[%c0_57, %c0_58] : memref<128x128xf32, #tpu.memory_space<vmem>>, vector<128x128xf32>
    %cst_59 = arith.constant dense<0.000000e+00> : vector<64x128xf32>
    %100 = tpu.matmul %98, %99, %cst_59 {dimension_numbers = #tpu.dot_dimension_numbers<[1], [0], [0], [1], [0, 0, 1, 1], [], []>} : vector<64x128xf32>, vector<128x128xf32>, vector<64x128xf32> -> vector<64x128xf32>
    %c0_60 = arith.constant 0 : index
    %c0_61 = arith.constant 0 : index
    %101 = vector.load %arg12[%c0_60, %c0_61] : memref<1x128xf32, #tpu.memory_space<vmem>>, vector<1x128xf32>
    %102 = vector.broadcast %101 : vector<1x128xf32> to vector<64x128xf32>
    %103 = arith.addf %100, %102 : vector<64x128xf32>
    %c0_62 = arith.constant 0 : index
    %c0_63 = arith.constant 0 : index
    %104 = vector.load %arg9[%c0_62, %c0_63] : memref<128x128xf32, #tpu.memory_space<vmem>>, vector<128x128xf32>
    %cst_64 = arith.constant dense<0.000000e+00> : vector<64x128xf32>
    %105 = tpu.matmul %96, %104, %cst_64 {dimension_numbers = #tpu.dot_dimension_numbers<[1], [0], [0], [1], [0, 0, 1, 1], [], []>} : vector<64x128xf32>, vector<128x128xf32>, vector<64x128xf32> -> vector<64x128xf32>
    %c0_65 = arith.constant 0 : index
    %c0_66 = arith.constant 0 : index
    %106 = vector.load %arg10[%c0_65, %c0_66] : memref<1x128xf32, #tpu.memory_space<vmem>>, vector<1x128xf32>
    %107 = vector.broadcast %106 : vector<1x128xf32> to vector<64x128xf32>
    %108 = arith.addf %105, %107 : vector<64x128xf32>
    %109 = arith.addf %108, %103 : vector<64x128xf32>
    %cst_67 = arith.constant 0.000000e+00 : f32
    %110 = vector.broadcast %cst_67 : f32 to vector<64x128xf32>
    %111 = arith.maximumf %109, %110 : vector<64x128xf32>
    %c0_68 = arith.constant 0 : index
    %c0_69 = arith.constant 0 : index
    %c0_70 = arith.constant 0 : index
    %112 = vector.load %arg13[%c0_68, %c0_69, %c0_70] : memref<1x64x128xf32, #tpu.memory_space<vmem>>, vector<1x64x128xf32>
    %113 = vector.shape_cast %112 : vector<1x64x128xf32> to vector<64x128xf32>
    %114 = vector.shape_cast %111 : vector<64x128xf32> to vector<1x64x128xf32>
    tpu.vector_store %arg13[%c0_68, %c0_69, %c0_70], %114 {strides = array<i32>} : memref<1x64x128xf32, #tpu.memory_space<vmem>>, vector<1x64x128xf32>,
    return
  }
  func.func @transform_0(%arg0: i32, %arg1: i32) -> (i32, i32, i32) {
    %c0_i32 = arith.constant 0 : i32
    %c0_i32_0 = arith.constant 0 : i32
    return %arg0, %arg1, %c0_i32 : i32, i32, i32
  }
  func.func @transform_1(%arg0: i32, %arg1: i32) -> (i32, i32, i32) {
    %c4_i32 = arith.constant 4 : i32
    %0 = arith.muli %arg1, %c4_i32 : i32
    %c1_i32 = arith.constant 1 : i32
    %1 = arith.subi %0, %c1_i32 : i32
    %c0_i32 = arith.constant 0 : i32
    %2 = arith.maxsi %1, %c0_i32 : i32
    %c0_i32_0 = arith.constant 0 : i32
    %c0_i32_1 = arith.constant 0 : i32
    return %arg0, %2, %c0_i32_0 : i32, i32, i32
  }
  func.func @transform_2(%arg0: i32, %arg1: i32) -> (i32, i32, i32) {
    %c1_i32 = arith.constant 1 : i32
    %0 = arith.addi %arg1, %c1_i32 : i32
    %c4_i32 = arith.constant 4 : i32
    %1 = arith.muli %0, %c4_i32 : i32
    %c15_i32 = arith.constant 15 : i32
    %2 = arith.minsi %1, %c15_i32 : i32
    %c0_i32 = arith.constant 0 : i32
    %c0_i32_0 = arith.constant 0 : i32
    return %arg0, %2, %c0_i32 : i32, i32, i32
  }
  func.func @transform_3(%arg0: i32, %arg1: i32) -> (i32, i32) {
    %c0_i32 = arith.constant 0 : i32
    %c0_i32_0 = arith.constant 0 : i32
    %c0_i32_1 = arith.constant 0 : i32
    return %c0_i32, %c0_i32_0 : i32, i32
  }
  func.func @transform_4(%arg0: i32, %arg1: i32) -> (i32, i32) {
    %c0_i32 = arith.constant 0 : i32
    %c0_i32_0 = arith.constant 0 : i32
    %c0_i32_1 = arith.constant 0 : i32
    return %c0_i32, %c0_i32_0 : i32, i32
  }
  func.func @transform_5(%arg0: i32, %arg1: i32) -> (i32, i32, i32) {
    %c0_i32 = arith.constant 0 : i32
    %c0_i32_0 = arith.constant 0 : i32
    %c0_i32_1 = arith.constant 0 : i32
    %c0_i32_2 = arith.constant 0 : i32
    return %c0_i32, %c0_i32_0, %c0_i32_1 : i32, i32, i32
  }
  func.func @transform_6(%arg0: i32, %arg1: i32) -> (i32, i32) {
    %c0_i32 = arith.constant 0 : i32
    %c0_i32_0 = arith.constant 0 : i32
    %c0_i32_1 = arith.constant 0 : i32
    return %c0_i32, %c0_i32_0 : i32, i32
  }
  func.func @transform_7(%arg0: i32, %arg1: i32) -> (i32, i32) {
    %c0_i32 = arith.constant 0 : i32
    %c0_i32_0 = arith.constant 0 : i32
    %c0_i32_1 = arith.constant 0 : i32
    return %c0_i32, %c0_i32_0 : i32, i32
  }
  func.func @transform_8(%arg0: i32, %arg1: i32) -> (i32, i32) {
    %c0_i32 = arith.constant 0 : i32
    %c0_i32_0 = arith.constant 0 : i32
    %c0_i32_1 = arith.constant 0 : i32
    return %c0_i32, %c0_i32_0 : i32, i32
  }
  func.func @transform_9(%arg0: i32, %arg1: i32) -> (i32, i32) {
    %c0_i32 = arith.constant 0 : i32
    %c0_i32_0 = arith.constant 0 : i32
    %c0_i32_1 = arith.constant 0 : i32
    return %c0_i32, %c0_i32_0 : i32, i32
  }
  func.func @transform_10(%arg0: i32, %arg1: i32) -> (i32, i32) {
    %c0_i32 = arith.constant 0 : i32
    %c0_i32_0 = arith.constant 0 : i32
    %c0_i32_1 = arith.constant 0 : i32
    return %c0_i32, %c0_i32_0 : i32, i32
  }
  func.func @transform_11(%arg0: i32, %arg1: i32) -> (i32, i32, i32) {
    %c0_i32 = arith.constant 0 : i32
    %c0_i32_0 = arith.constant 0 : i32
    return %arg0, %arg1, %c0_i32 : i32, i32, i32
  }
}

</mosaic_0001>

<bundles_post_ra>
// kernel: tpu_custom_call.1
= control target key start
LH: loop header
LB: loop body
LE: loop exit
PB: predicated region body
PF: predicated region fallthrough
CT: control target
= control target key end

     0   :  { %s3417_s0 = inlined_call_operand.hbm [shape: f32[2,256,128], index: 0, kind: input, shape index: {}]   ;;  %s3418_s1 = inlined_call_operand.hbm [shape: f32[2,256,128], index: 1, kind: input, shape index: {}]   ;;  %s3419_s2 = inlined_call_operand.hbm [shape: f32[2,256,128], index: 2, kind: input, shape index: {}]   ;;  %s3420_s3 = inlined_call_operand.hbm [shape: f32[128,128], index: 3, kind: input, shape index: {}]   ;;  %s3421_s4 = inlined_call_operand.vmem [shape: f32[1,128], index: 4, kind: input, shape index: {}]   ;;  %s3422_s5 = inlined_call_operand.hbm [shape: f32[9,128,128], index: 5, kind: input, shape index: {}]   ;;  %s3423_s6 = inlined_call_operand.vmem [shape: f32[1,128], index: 6, kind: input, shape index: {}]   ;;  %s3424_s7 = inlined_call_operand.hbm [shape: f32[128,128], index: 7, kind: input, shape index: {}]   ;;  %s3425_s8 = inlined_call_operand.vmem [shape: f32[1,128], index: 8, kind: input, shape index: {}]   ;;  %s3426_s9 = inlined_call_operand.hbm [shape: f32[128,128], index: 9, kind: input, shape index: {}]   ;;  %s3427_s10 = inlined_call_operand.vmem [shape: f32[1,128], index: 10, kind: input, shape index: {}]   ;;  %s3428_s11 = inlined_call_operand.hbm [shape: f32[2,256,128], index: 11, kind: output, shape index: {}]  }
   0x1   :  { %3450 = sst [smem:[#allocation38_spill]] %s3417_s0 }
   0x2   :  { %3451 = sst [smem:[#allocation39_spill]] %s3418_s1 }
   0x3   :  { %3452 = sst [smem:[#allocation40_spill]] %s3419_s2 }
   0x4   :  { %3453 = sst [smem:[#allocation41_spill]] %s3420_s3 }
   0x5   :  { %3454 = sst [smem:[#allocation42_spill]] %s3421_s4 }
   0x6   :  { %3455 = sst [smem:[#allocation43_spill]] %s3422_s5 }
   0x7   :  { %3456 = sst [smem:[#allocation44_spill]] %s3423_s6 }
   0x8   :  { %3457 = sst [smem:[#allocation45_spill]] %s3424_s7 }
   0x9   :  { %3458 = sst [smem:[#allocation46_spill]] %s3425_s8 }
   0xa   :  { %3459 = sst [smem:[#allocation47_spill]] %s3426_s9 }
   0xb   :  { %3460 = sst [smem:[#allocation48_spill]] %s3427_s10 }
   0xc   :  { %3461 = sst [smem:[#allocation49_spill]] %s3428_s11 }
   0xd   :  { %16 = vsyncpa [#allocation3], 0 }
   0xe   :  { %18 = vsyncpa [#allocation3 + $0x1], 0 }
   0xf   :  { %19 = vsyncpa [#allocation6], 0 }
  0x10   :  { %21 = vsyncpa [#allocation6 + $0x1], 0 }
  0x11   :  { %22 = vsyncpa [#allocation9], 0 }
  0x12   :  { %23 = vsyncpa [#allocation12], 0 }
  0x13   :  { %24 = vsyncpa [#allocation4], 0 }
  0x14   :  { %26 = vsyncpa [#allocation4 + $0x1], 0  ;;  %s2557_s17 = smov 0   ;;  %s2559_s18 = smov 0  }
  0x15   :  { %s2561_s19 = smov 0   ;;  %s2563_s20 = smov 0  }
  0x16   :  { %s2565_s21 = smov 0   ;;  %s2567_s22 = smov 0  }
  0x17   :  { %s2569_s23 = smov 0   ;;  %s2571_s24 = smov 0  }
  0x18   :  { %s2573_s25 = smov 0   ;;  %s2575_s26 = smov 0  }
  0x19   :  { %s2577_s27 = smov 0   ;;  %s2579_s28 = smov 0  }
  0x1a   :  { %s2581_s29 = smov 0   ;;  %s2583_s30 = smov 0  }
  0x1b LB: > { %3462 = sst [smem:[#allocation21_spill]] %s2435_s17  ;;  %s2628_s12 = sadd.s32 4294967295, %s2487_s30   ;;  %s2487_s30 = sphi %s2583_s30, %s32_s30   ;;  %s2483_s29 = sphi %s2581_s29, %s3530_s29   ;;  %s2479_s28 = sphi %s2579_s28, %s3537_s28   ;;  %s2475_s27 = sphi %s2577_s27, %s3528_s27   ;;  %s2471_s26 = sphi %s2575_s26, %s3536_s26   ;;  %s2467_s25 = sphi %s2573_s25, %s3535_s25   ;;  %s2463_s24 = sphi %s2571_s24, %s3534_s24   ;;  %s2459_s23 = sphi %s2569_s23, %s3533_s23   ;;  %s2455_s22 = sphi %s2567_s22, %s3525_s22   ;;  %s2451_s21 = sphi %s2565_s21, %s3524_s21   ;;  %s2447_s20 = sphi %s2563_s20, %s3523_s20   ;;  %s2443_s19 = sphi %s2561_s19, %s3532_s19   ;;  %s2439_s18 = sphi %s2559_s18, %s3522_s18   ;;  %s2435_s17 = sphi %s2557_s17, %s3521_s17  }
  0x1c   : > { %3463 = sst [smem:[#allocation22_spill]] %s2439_s18  ;;  %p1794_p0 = scmp.ge.s32.totalorder %s2487_s30, 1 }
  0x1d   : > { %3464 = sst [smem:[#allocation23_spill]] %s2443_s19  ;;  %p67_p1 = scmp.eq.s32.totalorder %s2628_s12, 0 }
  0x1e   : > { %3465 = sst [smem:[#allocation24_spill]] %s2451_s21  ;;  %p345_p2 = scmp.lt.s32.totalorder %s2487_s30, 9 }
  0x1f   : > { %3466 = sst [smem:[#allocation25_spill]] %s2455_s22  ;;  %s2489_s11 = smov [#allocation8]  }
  0x20   : > { %3467 = sst [smem:[#allocation26_spill]] %s2467_s25  ;;  %p2636_p3 = pnand %p1794_p0, %p345_p2 }
  0x21   : > { %3468 = sst [smem:[#allocation27_spill]] %s2471_s26  ;;  %s3431_s10 = smov 128  }
  0x22   : > { %3469 = sst [smem:[#allocation28_spill]] %s2475_s27  ;;  %p1946_p4 = pneg %p2636_p3 }
  0x23   : > { %3470 = sst [smem:[#allocation29_spill]] %s2483_s29  ;;  %s358_s27 = sshll.u32 %s2489_s11, 4  ;;  %s359_s27 = int_to_ptr.vmem [resolvable:$true] %s358_s27 }
  0x24   : > { %s3471_s3 = sld [smem:[#allocation41_spill]]  ;;  %p2644_p5 = pnand %p1946_p4, %p67_p1 }
  0x25   : > { %s3472_s16 = scalar_select %p2636_p3, 1, 0 }
  0x26   : > { %s3475_s7 = sld [smem:[#allocation45_spill]]  ;;  %s3433_s6 = smov 8  }
  0x27   : > { %3473 = sst [smem:[#allocation30_spill]] %s3472_s16  ;;  %s2492_s11 = smov [#allocation11]  }
  0x28   : > { %s392_s4 = sshll.u32 %s2492_s11, 4  ;;  %s44_s14 = sadd.s32 1, %s2483_s29  ;;  %s393_s4 = int_to_ptr.vmem [resolvable:$true] %s392_s4 }
  0x29   : > { %p61_p7 = scmp.eq.s32.totalorder %s2487_s30, 0  ;;  %s89_s26 = sadd.s32 1, %s2455_s22 }
  0x2a   : > { %s356_s15 = sshll.u32 %s3471_s3, 4  ;;  %s41_s3 = sadd.s32 1, %s2479_s28  ;;  %s357_s15 = int_to_ptr.hbm [resolvable:$true] %s356_s15 }
  0x2b   : > { %1949 = dma.hbm_to_vmem [thread:$0]  (!%p2644_p5), %s357_s15, 2048, %s359_s27, [#allocation9], %s3431_s10, %s3431_s10, %s3433_s6  }
  0x2c   : > { %s390_s8 = sshll.u32 %s3475_s7, 4  ;;  %p42_p6 = scmp.ge.s32.totalorder %s41_s3, 4  ;;  %s391_s8 = int_to_ptr.hbm [resolvable:$true] %s390_s8 }
  0x2d   : > { %1955 = dma.hbm_to_vmem [thread:$0]  (!%p2644_p5), %s391_s8, 2048, %s393_s4, [#allocation12], %s3431_s10, %s3431_s10, %s3433_s6  }
  0x2e   : > { %s1788_s7 = sshll.u32 %s2479_s28, 2  ;;  %s3539_s3 = smov (%p42_p6, %s41_s3), 0 }
  0x2f   : > { %3476 = sst [smem:[#allocation31_spill]] %s3539_s3  ;;  %s3541_s14 = smov (!%p42_p6, %s44_s14), %s2483_s29 }
  0x30   : > { %s49_s27 = ssub.s32 %s2479_s28, %s3539_s3  ;;  %s1789_s15 = sadd.s32 4294967295, %s1788_s7 }
  0x31   : > { %p46_p8 = scmp.ge.s32.totalorder %s3541_s14, 2  ;;  %p78_p9 = scmp.gt.s32.totalorder %s1789_s15, 0 }
  0x32   : > { %s1790_s4 = sshll.u32 %s3539_s3, 2  ;;  %p96_p10 = scmp.ne.s32.totalorder %s2455_s22, %s2451_s21 }
  0x33   : > { %s3543_s14 = smov (%p46_p8, %s3541_s14), 0  ;;  %s3545_s15 = smov (!%p78_p9, %s1789_s15), 0 }
  0x34   : > { %3477 = sst [smem:[#allocation32_spill]] %s3543_s14  ;;  %s2678_s8 = ssub.s32 %s2483_s29, %s3543_s14 }
  0x35   : > { %3478 = sst [smem:[#allocation33_spill]] %s2678_s8  ;;  %s1791_s11 = sadd.s32 4294967295, %s1790_s4 }
  0x36   : > { %s2681_s10 = sor.u32 %s49_s27, %s2678_s8  ;;  %p82_p11 = scmp.gt.s32.totalorder %s1791_s11, 0 }
  0x37   : > { %p51_p12 = scmp.eq.s32.totalorder %s2681_s10, 0  ;;  %p2686_p13 = por %p96_p10, %p61_p7 }
  0x38   : > { %s3547_s11 = smov (!%p82_p11, %s1791_s11), 0  ;;  %p102_p0 = scmp.ne.s32.totalorder %s2451_s21, %s2447_s20 }
  0x39   : > { %s2692_s14 = sadd.s32 4, %s1788_s7  ;;  %s85_s3 = ssub.s32 %s3545_s15, %s3547_s11 }
  0x3a   : > { %p114_p2 = scmp.lt.s32.totalorder %s2692_s14, 15  ;;  %s86_s27 = sor.u32 %s85_s3, %s2678_s8 }
  0x3b   : > { %p2698_p4 = por %p102_p0, %p67_p1  ;;  %p87_p6 = scmp.eq.s32.totalorder %s86_s27, 0 }
  0x3c   : > { %s2702_s2 = sadd.s32 4, %s1790_s4  ;;  %p3449_p9 = scmp.lt.s32.totalorder %s2487_s30, 8 }
  0x3d   : > { %s3480_s16 = scalar_select %p2698_p4, 1, 0 }
  0x3e   : > { %3482 = sst [smem:[#allocation35_spill]] %s2702_s2  ;;  %s2710_s7 = sshll.u32 %s2483_s29, 5 }
  0x3f   : > { %3481 = sst [smem:[#allocation34_spill]] %s3480_s16  ;;  %s450_s11 = sand.u32 1, %s2487_s30  }
  0x40   : > { %s2707_s20 = scalar_select %p87_p6, %s2455_s22, %s89_s26  }
  0x41   : > { %s452_s3 = sand.u32 1, %s2455_s22   ;;  %s1807_s0 = sshll.u32 %s3545_s15, 1 }
  0x42   : > { %3483 = sst [smem:[#allocation36_spill]] %s2707_s20  ;;  %s1804_s21 = sshll.u32 %s452_s3, 4 }
  0x43   : > { %s463_s8 = sadd.s32 %s1807_s0, %s2710_s7  ;;  %s454_s16 = scalar_lea.vmem [#allocation5], %s1804_s21 }
  0x44   : > { %s1809_s17 = sshll.u32 %s463_s8, 3  ;;  %s468_s4 = sshll.u32 %s454_s16, 4  ;;  %s469_s4 = int_to_ptr.vmem [resolvable:$true] %s468_s4 }
  0x45   : > { %s3484_s1 = sld [smem:[#allocation39_spill]]  ;;  %p1963_p10 = pnand %p3449_p9, %p2686_p13 }
  0x46   : > { %s3485_s5 = sld [smem:[#allocation43_spill]]  ;;  %s2725_s18 = scalar_lea.sflag [#allocation6], %s450_s11 }
  0x47   : > { %s3488_s9 = sld [smem:[#allocation47_spill]]  ;;  %s2493_s15 = smov [#allocation10]  }
  0x48   : > { %s375_s8 = sshll.u32 %s2493_s15, 4  ;;  %s2494_s11 = smov [#allocation13]   ;;  %s376_s8 = int_to_ptr.vmem [resolvable:$true] %s375_s8 }
  0x49   : > { %s53_s27 = sadd.s32 1, %s2467_s25  ;;  %p60_p11 = scmp.ne.s32.totalorder %s2467_s25, %s2463_s24 }
  0x4a   : > { %s2749_s26 = scalar_select %p51_p12, %s2467_s25, %s53_s27  }
  0x4b   : > { %s465_s19 = scalar_lea.hbm %s3484_s1, %s1809_s17  ;;  %s3486_s17 = smov 8  }
  0x4c   : > { %s466_s2 = sshll.u32 %s465_s19, 4  ;;  %s373_s0 = sshll.u32 %s3485_s5, 4  ;;  %s467_s2 = int_to_ptr.hbm [resolvable:$true] %s466_s2  ;;  %s374_s0 = int_to_ptr.hbm [resolvable:$true] %s373_s0 }
  0x4d   : > { %s3487_s19 = smov 128   ;;  %s407_s16 = sshll.u32 %s3488_s9, 4  ;;  %s408_s16 = int_to_ptr.hbm [resolvable:$true] %s407_s16 }
  0x4e   : > { %1965 = dma.hbm_to_vmem [thread:$0]  (!%p1963_p10), %s467_s2, 256, %s469_s4, %s2725_s18, %s3487_s19, %s3487_s19, %s3486_s17  }
  0x4f   : > { %1952 = dma.hbm_to_vmem [thread:$0]  (!%p2644_p5), %s374_s0, 18432, %s376_s8, [#allocation9], %s3487_s19, %s3487_s19, %s3486_s17  }
  0x50   : > { %s409_s2 = sshll.u32 %s2494_s11, 4  ;;  %s1787_s4 = sadd.s32 4294967294, %s2487_s30   ;;  %s410_s2 = int_to_ptr.vmem [resolvable:$true] %s409_s2 }
  0x51   : > { %1958 = dma.hbm_to_vmem [thread:$0]  (!%p2644_p5), %s408_s16, 2048, %s410_s2, [#allocation12], %s3487_s19, %s3487_s19, %s3486_s17  }
  0x52   : > { %3489 = sst [smem:[#allocation37_spill]] %s2749_s26  ;;  %p66_p13 = scmp.ne.s32.totalorder %s2463_s24, %s2459_s23 }
  0x53   : > { %p332_p0 = scmp.eq.s32.totalorder %s2628_s12, 7  ;;  %p338_p6 = scmp.eq.s32.totalorder %s1787_s4, 7 }
  0x54   : > { %p2758_p10 = por %p61_p7, %p60_p11  ;;  %p2764_p8 = por %p67_p1, %p66_p13 }
  0x55   : > { %p2768_p5 = por %p332_p0, %p60_p11  ;;  %p2772_p12 = por %p338_p6, %p66_p13 }
  0x56   : > { %s3494_s6 = sld [smem:[#allocation35_spill]]  ;;  %s426_s21 = sand.u32 1, %s2467_s25  }
  0x57   : > { %s3495_s16 = sld [smem:[#allocation23_spill]]  ;;  %s1801_s15 = sshll.u32 %s2479_s28, 3 }
  0x58   : > { %s3496_s8 = sld [smem:[#allocation22_spill]]  ;;  %s1800_s11 = sshll.u32 %s426_s21, 6 }
  0x59   : > { %s435_s2 = sadd.s32 %s2710_s7, %s1801_s15  ;;  %s3497_s4 = sld [smem:[#allocation21_spill]] }
  0x5a   : > { %s1803_s27 = sshll.u32 %s435_s2, 3  ;;  %s3498_s1 = sld [smem:[#allocation33_spill]] }
  0x5b   : > { %s430_s5 = scalar_lea.vmem [#allocation2], %s1800_s11  ;;  %s3499_s20 = sld [smem:[#allocation38_spill]] }
  0x5c   : > { %s440_s9 = sshll.u32 %s430_s5, 4  ;;  %p1960_p11 = pnand %p3449_p9, %p2758_p10  ;;  %s441_s9 = int_to_ptr.vmem [resolvable:$true] %s440_s9 }
  0x5d   : > { %s427_s15 = scalar_lea.sflag [#allocation3], %s426_s21  ;;  %s3549_s14 = smov (!%p114_p2, %s2692_s14), 15 }
  0x5e   : > { %p3500_p13 = scmp.lt.s32.totalorder %s3494_s6, 15  ;;  %s125_s5 = sadd.s32 1, %s3495_s16 }
  0x5f   : > { %p132_p0 = scmp.ne.s32.totalorder %s3495_s16, %s3496_s8  ;;  %p138_p6 = scmp.ne.s32.totalorder %s3496_s8, %s3497_s4 }
  0x60   : > { %s3551_s6 = smov (!%p3500_p13, %s3494_s6), 15  ;;  %s1812_s26 = sshll.u32 %s3549_s14, 1 }
  0x61   : > { %s437_s22 = scalar_lea.hbm %s3499_s20, %s1803_s27  ;;  %s121_s29 = ssub.s32 %s3549_s14, %s3551_s6 }
  0x62   : > { %s438_s25 = sshll.u32 %s437_s22, 4  ;;  %s122_s22 = sor.u32 %s121_s29, %s3498_s1  ;;  %s439_s25 = int_to_ptr.hbm [resolvable:$true] %s438_s25 }
  0x63   : > { %1962 = dma.hbm_to_vmem [thread:$0]  (!%p1960_p11), %s439_s25, 1024, %s441_s9, %s427_s15, %s3487_s19, %s3487_s19, %s3486_s17  }
  0x64   : > { %p2803_p10 = por %p132_p0, %p61_p7  ;;  %p123_p9 = scmp.eq.s32.totalorder %s122_s22, 0 }
  0x65   : > { %p2809_p11 = por %p138_p6, %p67_p1  ;;  %s480_s25 = sand.u32 1, %s3495_s16  }
  0x66   : > { %s3553_s16 = smov (!%p123_p9, %s3495_s16), %s125_s5  ;;  %s1810_s3 = sshll.u32 %s480_s25, 4 }
  0x67   : > { %s491_s1 = sadd.s32 %s1812_s26, %s2710_s7  ;;  %s3503_s11 = sld [smem:[#allocation40_spill]] }
  0x68   : > { %s1814_s6 = sshll.u32 %s491_s1, 3  ;;  %s482_s4 = scalar_lea.vmem [#allocation7], %s1810_s3 }
  0x69   : > { %s496_s27 = sshll.u32 %s482_s4, 4  ;;  %p3504_p7 = scmp.lt.s32.totalorder %s2487_s30, 8  ;;  %s497_s27 = int_to_ptr.vmem [resolvable:$true] %s496_s27 }
  0x6a   : > { %s2832_s7 = sand.u32 (!%p2636_p3), 1, %s2463_s24  }
  0x6b   : > { %p1966_p2 = pnand %p3504_p7, %p2803_p10  ;;  %508 = sbr.rel (%p2636_p3) target bundleno = 763 (0x2fb), region = 64 }
  0x6c   : > { %s1816_s5 = sshll.u32 (!%p2636_p3), %s2832_s7, 6  ;;  %s511_s29 = scalar_lea.sflag (!%p2636_p3), [#allocation3], %s2832_s7 }
  0x6d   : > { %s493_s2 = scalar_lea.hbm %s3503_s11, %s1814_s6  ;;  %s2838_s22 = scalar_lea.vmem (!%p2636_p3), [#allocation2], %s1816_s5 }
  0x6e   : > { %s494_s15 = sshll.u32 %s493_s2, 4  ;;  %s495_s15 = int_to_ptr.hbm [resolvable:$true] %s494_s15 }
  0x6f   : > { %1968 = dma.hbm_to_vmem [thread:$0]  (!%p1966_p2), %s495_s15, 256, %s497_s27, %s2725_s18, %s3487_s19, %s3487_s19, %s3486_s17  }
  0x70   : > { %2410 = dma.done.wait (%p2764_p8), %s511_s29, 1024  }
  0x71   : > { %2412 = vsyncadd (%p2764_p8), %s511_s29, 4294966272  ;;  %s3506_s18 = sld [smem:[#allocation24_spill]]  ;;  %s520_s19 = sand.u32 1, %s2628_s12  }
  0x72   : > { %s521_s26 = scalar_lea.sflag [#allocation6], %s520_s19 }
  0x77   : > { %s522_s20 = sand.u32 1, %s3506_s18  }
  0x78   : > { %s2846_s25 = sshll.u32 %s522_s20, 4 }
  0x79   : > { %s524_s3 = scalar_lea.vmem [#allocation5], %s2846_s25 }
  0x7a   : > { %2414 = dma.done.wait (%p2698_p4), %s521_s26, 256  }
  0x7b   : > { %2416 = vsyncadd (%p2698_p4), %s521_s26, 4294967040  ;;  %s3508_s1 = sld [smem:[#allocation22_spill]] }
  0x81   : > { %s532_s6 = sand.u32 1, %s3508_s1  }
  0x82   : > { %s2854_s13 = sshll.u32 %s532_s6, 4 }
  0x83   : > { %s534_s21 = scalar_lea.vmem [#allocation7], %s2854_s13 }
  0x84   : > { %2418 = dma.done.wait (%p2809_p11), %s521_s26, 256  }
  0x85   : > { %2420 = vsyncadd (%p2809_p11), %s521_s26, 4294967040 }
  0x86   : > { %2422 = dma.done.wait (%p67_p1), [#allocation9], 20480  }
  0x87   : > { %2424 = vsyncadd (%p67_p1), [#allocation9], 4294946816 }
  0x88   : > { %2426 = dma.done.wait (%p67_p1), [#allocation12], 4096  }
  0x89   : > { %2428 = vsyncadd (%p67_p1), [#allocation12], 4294963200  ;;  %v631_v0 = vld [vmem:[#allocation8 + $0x78] sm:$0xff]  ;;  %v630_v1 = vld [vmem:[#allocation8 + $0x70] sm:$0xff]  ;;  %s3509_s12 = sld [smem:[#allocation27_spill]]  ;;  %s3338_s25 = scalar_lea.vmem [#allocation14], %s1816_s5 }
  0x8a   : > { %639 = vmatpush.msra.mxu0 %v631_v0  ;;  %672 = vmatpush.msra.mxu1 %v631_v0  ;;  %v629_v2 = vld [vmem:[#allocation8 + $0x68] sm:$0xff]  ;;  %v628_v3 = vld [vmem:[#allocation8 + $0x60] sm:$0xff]  ;;  %v627_v4 = vld [vmem:[#allocation8 + $0x58] sm:$0xff]  ;;  %s3510_s2 = sld [smem:[#allocation42_spill]]  ;;  %s1606_s11 = sshll.u32 %s3338_s25, 4  ;;  %s1607_s11 = int_to_ptr.vmem [resolvable:$true] %s1606_s11 }
  0x8b   : > { %710 = vmatpush.msra.mxu2 %v631_v0  ;;  %v626_v5 = vld [vmem:[#allocation8 + $0x50] sm:$0xff]  ;;  %v625_v6 = vld [vmem:[#allocation8 + $0x48] sm:$0xff]  ;;  %v624_v7 = vld [vmem:[#allocation8 + $0x40] sm:$0xff]  ;;  %s3515_s14 = sld [smem:[#allocation44_spill]] }
  0x8c   : > { %640 = vmatpush.msra.mxu0 %v630_v1  ;;  %673 = vmatpush.msra.mxu1 %v630_v1  ;;  %v623_v8 = vld [vmem:[#allocation8 + $0x38] sm:$0xff]  ;;  %v622_v9 = vld [vmem:[#allocation8 + $0x30] sm:$0xff]  ;;  %v621_v10 = vld [vmem:[#allocation8 + $0x28] sm:$0xff]  ;;  %s3516_s18 = sld [smem:[#allocation48_spill]] }
  0x8d   : > { %711 = vmatpush.msra.mxu2 %v630_v1  ;;  %v620_v11 = vld [vmem:[#allocation8 + $0x20] sm:$0xff]  ;;  %v619_v12 = vld [vmem:[#allocation8 + $0x18] sm:$0xff]  ;;  %v618_v13 = vld [vmem:[#allocation8 + $0x10] sm:$0xff]  ;;  %s3517_s20 = sld [smem:[#allocation46_spill]] }
  0x8e   : > { %641 = vmatpush.msra.mxu0 %v629_v2  ;;  %674 = vmatpush.msra.mxu1 %v629_v2  ;;  %v617_v14 = vld [vmem:[#allocation8 + $0x8] sm:$0xff]  ;;  %v616_v15 = vld [vmem:[#allocation8] sm:$0xff]  ;;  %v704_v22 = vld [vmem:[%s2838_s22 + $0x10] sm:$0xff]  ;;  %s3518_s5 = sld [smem:[#allocation28_spill]] }
  0x8f   : > { %712 = vmatpush.msra.mxu2 %v629_v2  ;;  %v634_v16 = vld [vmem:[%s524_s3] sm:$0xff]  ;;  %v635_v19 = vld [vmem:[%s524_s3 + $0x8] sm:$0xff]  ;;  %p633_p1 = scmp.gt.s32.totalorder %s3509_s12, 0  ;;  %p669_p3 = scmp.lt.s32.totalorder %s3509_s12, 3 }
  0x90   : > { %642 = vmatpush.msra.mxu0 %v628_v3  ;;  %675 = vmatpush.msra.mxu1 %v628_v3  ;;  %v670_v17 = vld [vmem:[%s534_s21] sm:$0xff]  ;;  %v671_v20 = vld [vmem:[%s534_s21 + $0x8] sm:$0xff]  ;;  %s1877_s26 = sshll.u32 %s3509_s12, 3 }
  0x91   : > { %713 = vmatpush.msra.mxu2 %v628_v3  ;;  %v702_v18 = vld [vmem:[%s2838_s22] sm:$0xff]  ;;  %v703_v21 = vld [vmem:[%s2838_s22 + $0x8] sm:$0xff]  ;;  %v705_v23 = vld [vmem:[%s2838_s22 + $0x18] sm:$0xff]  ;;  %s664_s9 = scalar_select %p633_p1, 1, 0 }
  0x92   : > { %643 = vmatpush.msra.mxu0 %v627_v4  ;;  %676 = vmatpush.msra.mxu1 %v627_v4  ;;  %v880_v24 = vld [vmem:[#allocation10 + $0xf8] sm:$0xff]  ;;  %v879_v25 = vld [vmem:[#allocation10 + $0xf0] sm:$0xff]  ;;  %v878_v26 = vld [vmem:[#allocation10 + $0xe8] sm:$0xff]  ;;  %s697_s4 = scalar_select %p669_p3, 1, 0 }
  0x93   : > { %714 = vmatpush.msra.mxu2 %v627_v4  ;;  %881 = vmatpush.msra.mxu3 %v880_v24  ;;  %v863_v27 = vld [vmem:[#allocation10 + $0x78] sm:$0xff]  ;;  %v862_v30 = vld [vmem:[#allocation10 + $0x70] sm:$0xff]  ;;  %v877_v31 = vld [vmem:[#allocation10 + $0xe0] sm:$0xff] }
  0x94   : > { %644 = vmatpush.msra.mxu0 %v626_v5  ;;  %677 = vmatpush.msra.mxu1 %v626_v5  ;;  %v979_v28 = vld [vmem:[#allocation10 + $0x178] sm:$0xff]  ;;  %v978_v32 = vld [vmem:[#allocation10 + $0x170] sm:$0xff]  ;;  %v706_v34 = vld [vmem:[%s2838_s22 + $0x20] sm:$0xff]  ;;  %s1878_s3 = sshll.u32 %s3518_s5, 5 }
  0x95   : > { %715 = vmatpush.msra.mxu2 %v626_v5  ;;  %882 = vmatpush.msra.mxu3 %v879_v25  ;;  %v1045_v29 = vld [vmem:[#allocation10 + $0x1f8] sm:$0xff]  ;;  %v1044_v33 = vld [vmem:[#allocation10 + $0x1f0] sm:$0xff]  ;;  %v861_v35 = vld [vmem:[#allocation10 + $0x68] sm:$0xff]  ;;  %s1603_s1 = sadd.s32 %s1878_s3, %s1877_s26 }
  0x96   : > { %645 = vmatpush.msra.mxu0 %v625_v6  ;;  %678 = vmatpush.msra.mxu1 %v625_v6  ;;  %v977_v36 = vld [vmem:[#allocation10 + $0x168] sm:$0xff]  ;;  %v876_v37 = vld [vmem:[#allocation10 + $0xd8] sm:$0xff]  ;;  %v860_v39 = vld [vmem:[#allocation10 + $0x60] sm:$0xff]  ;;  %s1879_s6 = sshll.u32 %s1603_s1, 3 }
  0x97   : > { %716 = vmatpush.msra.mxu2 %v625_v6  ;;  %883 = vmatpush.msra.mxu3 %v878_v26  ;;  %v1043_v38 = vld [vmem:[#allocation10 + $0x1e8] sm:$0xff]  ;;  %v976_v40 = vld [vmem:[#allocation10 + $0x160] sm:$0xff]  ;;  %v875_v41 = vld [vmem:[#allocation10 + $0xd0] sm:$0xff] }
  0x98   : > { %646 = vmatpush.msra.mxu0 %v624_v7  ;;  %679 = vmatpush.msra.mxu1 %v624_v7  ;;  %v1042_v42 = vld [vmem:[#allocation10 + $0x1e0] sm:$0xff]  ;;  %v859_v43 = vld [vmem:[#allocation10 + $0x58] sm:$0xff]  ;;  %v874_v45 = vld [vmem:[#allocation10 + $0xc8] sm:$0xff] }
  0x99   : > { %717 = vmatpush.msra.mxu2 %v624_v7  ;;  %884 = vmatpush.msra.mxu3 %v877_v31  ;;  %v975_v44 = vld [vmem:[#allocation10 + $0x158] sm:$0xff]  ;;  %v858_v47 = vld [vmem:[#allocation10 + $0x50] sm:$0xff]  ;;  %v873_v49 = vld [vmem:[#allocation10 + $0xc0] sm:$0xff] }
  0x9a   : > { %647 = vmatpush.msra.mxu0 %v623_v8  ;;  %680 = vmatpush.msra.mxu1 %v623_v8  ;;  %v1041_v46 = vld [vmem:[#allocation10 + $0x1d8] sm:$0xff]  ;;  %v974_v48 = vld [vmem:[#allocation10 + $0x150] sm:$0xff]  ;;  %v707_v51 = vld [vmem:[%s2838_s22 + $0x28] sm:$0xff] }
  0x9b   : > { %718 = vmatpush.msra.mxu2 %v623_v8  ;;  %885 = vmatpush.msra.mxu3 %v876_v37  ;;  %v1040_v50 = vld [vmem:[#allocation10 + $0x1d0] sm:$0xff]  ;;  %v857_v52 = vld [vmem:[#allocation10 + $0x48] sm:$0xff]  ;;  %v872_v53 = vld [vmem:[#allocation10 + $0xb8] sm:$0xff] }
  0x9c   : > { %648 = vmatpush.msra.mxu0 %v622_v9  ;;  %681 = vmatpush.msra.mxu1 %v622_v9  ;;  %v973_v54 = vld [vmem:[#allocation10 + $0x148] sm:$0xff]  ;;  %v871_v56 = vld [vmem:[#allocation10 + $0xb0] sm:$0xff]  ;;  %v869_v58 = vld [vmem:[#allocation10 + $0xa0] sm:$0xff] }
  0x9d   : > { %719 = vmatpush.msra.mxu2 %v622_v9  ;;  %886 = vmatpush.msra.mxu3 %v875_v41  ;;  %v1039_v55 = vld [vmem:[#allocation10 + $0x1c8] sm:$0xff]  ;;  %v708_v59 = vld [vmem:[%s2838_s22 + $0x30] sm:$0xff]  ;;  %v868_v60 = vld [vmem:[#allocation10 + $0x98] sm:$0xff] }
  0x9e   : > { %649 = vmatpush.msra.mxu0 %v621_v10  ;;  %682 = vmatpush.msra.mxu1 %v621_v10  ;;  %v870_v57 = vld [vmem:[#allocation10 + $0xa8] sm:$0xff]  ;;  %v709_v61 = vld [vmem:[%s2838_s22 + $0x38] sm:$0xff]  ;;  %v867_v62 = vld [vmem:[#allocation10 + $0x90] sm:$0xff] }
  0x9f   : > { %720 = vmatpush.msra.mxu2 %v621_v10  ;;  %887 = vmatpush.msra.mxu3 %v874_v45  ;;  %v856_v63 = vld [vmem:[#allocation10 + $0x40] sm:$0xff]  ;;  %v866_v2 = vld [vmem:[#allocation10 + $0x88] sm:$0xff]  ;;  %v855_v3 = vld [vmem:[#allocation10 + $0x38] sm:$0xff] }
  0xa0   : > { %650 = vmatpush.msra.mxu0 %v620_v11  ;;  %683 = vmatpush.msra.mxu1 %v620_v11  ;;  %v972_v0 = vld [vmem:[#allocation10 + $0x140] sm:$0xff]  ;;  %v971_v4 = vld [vmem:[#allocation10 + $0x138] sm:$0xff]  ;;  %v854_v7 = vld [vmem:[#allocation10 + $0x30] sm:$0xff] }
  0xa1   : > { %721 = vmatpush.msra.mxu2 %v620_v11  ;;  %888 = vmatpush.msra.mxu3 %v873_v49  ;;  %v1038_v1 = vld [vmem:[#allocation10 + $0x1c0] sm:$0xff]  ;;  %v1037_v5 = vld [vmem:[#allocation10 + $0x1b8] sm:$0xff]  ;;  %v970_v8 = vld [vmem:[#allocation10 + $0x130] sm:$0xff] }
  0xa2   : > { %651 = vmatpush.msra.mxu0 %v619_v12  ;;  %684 = vmatpush.msra.mxu1 %v619_v12  ;;  %v865_v6 = vld [vmem:[#allocation10 + $0x80] sm:$0xff]  ;;  %v1036_v9 = vld [vmem:[#allocation10 + $0x1b0] sm:$0xff]  ;;  %v853_v10 = vld [vmem:[#allocation10 + $0x28] sm:$0xff] }
  0xa3   : > { %722 = vmatpush.msra.mxu2 %v619_v12  ;;  %889 = vmatpush.msra.mxu3 %v872_v53  ;;  %v969_v11 = vld [vmem:[#allocation10 + $0x128] sm:$0xff]  ;;  %v1110_v26 = vld [vmem:[#allocation10 + $0x270] sm:$0xff]  ;;  %v1108_v31 = vld [vmem:[#allocation10 + $0x260] sm:$0xff] }
  0xa4   : > { %652 = vmatpush.msra.mxu0 %v618_v13  ;;  %685 = vmatpush.msra.mxu1 %v618_v13  ;;  %v1035_v12 = vld [vmem:[#allocation10 + $0x1a8] sm:$0xff]  ;;  %v1103_v45 = vld [vmem:[#allocation10 + $0x238] sm:$0xff] }
  0xa5   : > { %723 = vmatpush.msra.mxu2 %v618_v13  ;;  %890 = vmatpush.msra.mxu3 %v871_v56  ;;  %v1111_v13 = vld [vmem:[#allocation10 + $0x278] sm:$0xff]  ;;  %v965_v24 = vld [vmem:[#allocation10 + $0x108] sm:$0xff] }
  0xa6   : > { %653 = vmatpush.msra.mxu0 %v617_v14  ;;  %686 = vmatpush.msra.mxu1 %v617_v14  ;;  %v1031_v25 = vld [vmem:[#allocation10 + $0x188] sm:$0xff] }
  0xa7   : > { %724 = vmatpush.msra.mxu2 %v617_v14  ;;  %891 = vmatpush.msra.mxu3 %v870_v57  ;;  %v852_v14 = vld [vmem:[#allocation10 + $0x20] sm:$0xff] }
  0xa8   : > { %654 = vmatpush.msra.mxu0 %v616_v15  ;;  %687 = vmatpush.msra.mxu1 %v616_v15 }
  0xa9   : > { %725 = vmatpush.msra.mxu2 %v616_v15  ;;  %655 = vmatmul.f32.vlgmr.msra.gmra.mxu0 %v634_v16  ;;  %v968_v15 = vld [vmem:[#allocation10 + $0x120] sm:$0xff] }
  0xaa   : > { %688 = vmatmul.f32.vlgmr.msra.gmra.mxu1 %v670_v17  ;;  %726 = vmatmul.f32.vlgmr.msra.gmra.mxu2 %v702_v18  ;;  %v1034_v16 = vld [vmem:[#allocation10 + $0x1a0] sm:$0xff]  ;;  %v851_v17 = vld [vmem:[#allocation10 + $0x18] sm:$0xff] }
  0xab   : > { %922 = vmatpush.msrb.mxu0 %v863_v27  ;;  %980 = vmatpush.msrb.mxu1 %v979_v28  ;;  %v967_v18 = vld [vmem:[#allocation10 + $0x118] sm:$0xff]  ;;  %v1109_v27 = vld [vmem:[#allocation10 + $0x268] sm:$0xff]  ;;  %v848_v28 = vld [vmem:[#allocation10] sm:$0xff] }
  0xac   : > { %1046 = vmatpush.msrb.mxu2 %v1045_v29  ;;  %892 = vmatpush.msra.mxu3 %v869_v58  ;;  %v964_v29 = vld [vmem:[#allocation10 + $0x100] sm:$0xff] }
  0xad   : > { %923 = vmatpush.msrb.mxu0 %v862_v30  ;;  %981 = vmatpush.msrb.mxu1 %v978_v32  ;;  %v1030_v30 = vld [vmem:[#allocation10 + $0x180] sm:$0xff]  ;;  %v1107_v32 = vld [vmem:[#allocation10 + $0x258] sm:$0xff] }
  0xae   : > { %1047 = vmatpush.msrb.mxu2 %v1044_v33  ;;  %893 = vmatpush.msra.mxu3 %v868_v60  ;;  %v1106_v33 = vld [vmem:[#allocation10 + $0x250] sm:$0xff] }
  0xaf   : > { %924 = vmatpush.msrb.mxu0 %v861_v35  ;;  %982 = vmatpush.msrb.mxu1 %v977_v36  ;;  %v1105_v35 = vld [vmem:[#allocation10 + $0x248] sm:$0xff]  ;;  %v665_v36 = vstv %s664_s9  ;;  %s3519_s9 = sld [smem:[#allocation49_spill]] }
  0xb0   : > { %1048 = vmatpush.msrb.mxu2 %v1043_v38  ;;  %894 = vmatpush.msra.mxu3 %v867_v62  ;;  %vm2893_vm0 = vcmp.eq.s32.totalorder %v665_v36, 1  ;;  %v1101_v62 = vld [vmem:[#allocation10 + $0x228] sm:$0xff]  ;;  %v1306_v36 = vld [vmem:[#allocation10 + $0x3e0] sm:$0xff] }
  0xb1   : > { %658 = vmatmul.f32.gmra.mxu0 %v635_v19  ;;  %983 = vmatpush.msrb.mxu1 %v976_v40  ;;  %v1033_v19 = vld [vmem:[#allocation10 + $0x198] sm:$0xff] }
  0xb2   : > { %691 = vmatmul.f32.gmra.mxu1 %v671_v20  ;;  %729 = vmatmul.f32.gmra.mxu2 %v703_v21  ;;  %v850_v20 = vld [vmem:[#allocation10 + $0x10] sm:$0xff] }
  0xb3   : > { %925 = vmatpush.msrb.mxu0 %v860_v39  ;;  %1049 = vmatpush.msrb.mxu2 %v1042_v42  ;;  %v966_v21 = vld [vmem:[#allocation10 + $0x110] sm:$0xff]  ;;  %v1104_v42 = vld [vmem:[#allocation10 + $0x240] sm:$0xff] }
  0xb4   : > { %984 = vmatpush.msrb.mxu1 %v975_v44  ;;  %895 = vmatpush.msra.mxu3 %v866_v2  ;;  %v759_v44 = vlaneseq }
  0xb5   : > { %926 = vmatpush.msrb.mxu0 %v859_v43  ;;  %1050 = vmatpush.msrb.mxu2 %v1041_v46  ;;  %s1605_s8 = scalar_lea.hbm %s3519_s9, %s1879_s6  ;;  %s2345_s29 = scalar_lea.hbm %s3519_s9, 512 }
  0xb6   : > { %985 = vmatpush.msrb.mxu1 %v974_v48  ;;  %896 = vmatpush.msra.mxu3 %v865_v6  ;;  %s1608_s12 = sshll.u32 %s1605_s8, 4  ;;  %s1609_s12 = int_to_ptr.hbm [resolvable:$true] %s1608_s12 }
  0xb7   : > { %927 = vmatpush.msrb.mxu0 %v858_v47  ;;  %1051 = vmatpush.msrb.mxu2 %v1040_v50  ;;  %v698_v47 = vstv %s697_s4  ;;  %s2339_s4 = sshra.s32 %s1609_s12, 4  ;;  %s2340_s4 = int_to_ptr.hbm [resolvable:$true] %s2339_s4 }
  0xb8   : > { %986 = vmatpush.msrb.mxu1 %v973_v54  ;;  %1112 = vmatpush.msrb.mxu3 %v1111_v13  ;;  %vm2915_vm1 = vcmp.eq.s32.totalorder %v698_v47, 1  ;;  %s2341_s27 = scalar_lea.hbm %s2340_s4, 64  ;;  %p2346_p13 = scmp.lt.s32.totalorder %s2340_s4, %s3519_s9 }
  0xb9   : > { %928 = vmatpush.msrb.mxu0 %v857_v52  ;;  %1052 = vmatpush.msrb.mxu2 %v1039_v55  ;;  %v2904_v52 = vshrl.u32 %v759_v44, 7  ;;  %v1102_v55 = vld [vmem:[#allocation10 + $0x230] sm:$0xff]  ;;  %v1239_v44 = vld [vmem:[#allocation10 + $0x358] sm:$0xff]  ;;  %p2342_p4 = scmp.ne.s32.totalorder %s2340_s4, %s2341_s27  ;;  %p2347_p0 = scmp.lt.s32.totalorder %s2345_s29, %s2341_s27 }
  0xba   : > { %732 = vmatmul.f32.gmra.mxu2 %v704_v22  ;;  %987 = vmatpush.msrb.mxu1 %v972_v0  ;;  %v1032_v22 = vld [vmem:[#allocation10 + $0x190] sm:$0xff] }
  0xbb   : > { %929 = vmatpush.msrb.mxu0 %v856_v63  ;;  %1053 = vmatpush.msrb.mxu2 %v1038_v1  ;;  %vm776_vm2 = vcmp.lt.s32.totalorder %v2904_v52, 1  ;;  %vm1888_vm3 = vcmp.ne.s32.totalorder %v2904_v52, 0  ;;  %vm819_vm4 = vcmp.lt.s32.totalorder %v2904_v52, 7  ;;  %p2343_p8 = pnand %p2342_p4, %p2768_p5  ;;  %p2348_p6 = por %p2347_p0, %p2346_p13 }
  0xbc   : > { %988 = vmatpush.msrb.mxu1 %v971_v4  ;;  %1113 = vmatpush.msrb.mxu3 %v1110_v26 }
  0xbd   : > { %930 = vmatpush.msrb.mxu0 %v855_v3  ;;  %1054 = vmatpush.msrb.mxu2 %v1037_v5  ;;  %p2344_p9 = pneg %p2343_p8 }
  0xbe   : > { %989 = vmatpush.msrb.mxu1 %v970_v8  ;;  %1114 = vmatpush.msrb.mxu3 %v1109_v27  ;;  %v1175_v27 = vld [vmem:[#allocation10 + $0x2e8] sm:$0xff] }
  0xbf   : > { %931 = vmatpush.msrb.mxu0 %v854_v7  ;;  %1055 = vmatpush.msrb.mxu2 %v1036_v9  ;;  %p2349_p10 = pnand %p2348_p6, %p2344_p9 }
  0xc0   : > { %990 = vmatpush.msrb.mxu1 %v969_v11  ;;  %1115 = vmatpush.msrb.mxu3 %v1108_v31 }
  0xc1   : > { %932 = vmatpush.msrb.mxu0 %v853_v10  ;;  %1056 = vmatpush.msrb.mxu2 %v1035_v12 }
  0xc2   : > { %735 = vmatmul.f32.gmra.mxu2 %v705_v23  ;;  %991 = vmatpush.msrb.mxu1 %v968_v15  ;;  %v849_v23 = vld [vmem:[#allocation10 + $0x8] sm:$0xff]  ;;  %v1100_v15 = vld [vmem:[#allocation10 + $0x220] sm:$0xff] }
  0xc3   : > { %933 = vmatpush.msrb.mxu0 %v852_v14  ;;  %1057 = vmatpush.msrb.mxu2 %v1034_v16  ;;  %v2968_v14 = vadd.s32 8, %v2904_v52  ;;  %v1177_v16 = vld [vmem:[#allocation10 + $0x2f8] sm:$0xff] }
  0xc4   : > { %992 = vmatpush.msrb.mxu1 %v967_v18  ;;  %1116 = vmatpush.msrb.mxu3 %v1107_v32  ;;  %v1309_v18 = vld [vmem:[#allocation10 + $0x3f8] sm:$0xff] }
  0xc5   : > { %934 = vmatpush.msrb.mxu0 %v851_v17  ;;  %1058 = vmatpush.msrb.mxu2 %v1033_v19  ;;  %v1243_v17 = vld [vmem:[#allocation10 + $0x378] sm:$0xff]  ;;  %v1176_v19 = vld [vmem:[#allocation10 + $0x2f0] sm:$0xff]  ;;  %vm1889_vm5 = vcmp.ne.s32.totalorder %v2968_v14, 15 }
  0xc6   : > { %993 = vmatpush.msrb.mxu1 %v966_v21  ;;  %1117 = vmatpush.msrb.mxu3 %v1106_v33  ;;  %v1174_v33 = vld [vmem:[#allocation10 + $0x2e0] sm:$0xff]  ;;  %v1459_v14 = vld [vmem:[#allocation13 + $0x70] sm:$0xff] }
  0xc7   : > { %935 = vmatpush.msrb.mxu0 %v850_v20  ;;  %1059 = vmatpush.msrb.mxu2 %v1032_v22  ;;  %v1242_v20 = vld [vmem:[#allocation10 + $0x370] sm:$0xff] }
  0xc8   : > { %994 = vmatpush.msrb.mxu1 %v965_v24  ;;  %1118 = vmatpush.msrb.mxu3 %v1105_v35  ;;  %v1099_v24 = vld [vmem:[#allocation10 + $0x218] sm:$0xff]  ;;  %v1240_v35 = vld [vmem:[#allocation10 + $0x360] sm:$0xff] }
  0xc9   : > { %936 = vmatpush.msrb.mxu0 %v849_v23  ;;  %1060 = vmatpush.msrb.mxu2 %v1031_v25  ;;  %v1308_v23 = vld [vmem:[#allocation10 + $0x3f0] sm:$0xff] }
  0xca   : > { %738 = vmatmul.f32.gmra.mxu2 %v706_v34  ;;  %995 = vmatpush.msrb.mxu1 %v964_v29  ;;  %v2889_v34 = vld [vmem:[%s3510_s2] ss:$0 sm:$0xff]  ;;  %v1307_v29 = vld [vmem:[#allocation10 + $0x3e8] sm:$0xff]  ;;  %s1592_s2 = scalar_lea.sflag [#allocation4], %s2832_s7 }
  0xcb   : > { %937 = vmatpush.msrb.mxu0 %v848_v28  ;;  %1061 = vmatpush.msrb.mxu2 %v1030_v30  ;;  %v1241_v28 = vld [vmem:[#allocation10 + $0x368] sm:$0xff] }
  0xcc   : > { %1119 = vmatpush.msrb.mxu3 %v1104_v42  ;;  %1244 = vmatpush.msra.mxu1 %v1243_v17  ;;  %v1098_v42 = vld [vmem:[#allocation10 + $0x210] sm:$0xff] }
  0xcd   : > { %1178 = vmatpush.msra.mxu0 %v1177_v16  ;;  %1310 = vmatpush.msra.mxu2 %v1309_v18  ;;  %v1169_v16 = vld [vmem:[#allocation10 + $0x2b8] sm:$0xff]  ;;  %v1234_v17 = vld [vmem:[#allocation10 + $0x330] sm:$0xff] }
  0xce   : > { %1120 = vmatpush.msrb.mxu3 %v1103_v45  ;;  %1245 = vmatpush.msra.mxu1 %v1242_v20  ;;  %v1305_v45 = vld [vmem:[#allocation10 + $0x3d8] sm:$0xff]  ;;  %v1300_v18 = vld [vmem:[#allocation10 + $0x3b0] sm:$0xff] }
  0xcf   : > { %1179 = vmatpush.msra.mxu0 %v1176_v19  ;;  %1311 = vmatpush.msra.mxu2 %v1308_v23 }
  0xd0   : > { %1121 = vmatpush.msrb.mxu3 %v1102_v55  ;;  %1246 = vmatpush.msra.mxu1 %v1241_v28  ;;  %v1232_v28 = vld [vmem:[#allocation10 + $0x320] sm:$0xff] }
  0xd1   : > { %1180 = vmatpush.msra.mxu0 %v1175_v27  ;;  %1312 = vmatpush.msra.mxu2 %v1307_v29  ;;  %v1299_v27 = vld [vmem:[#allocation10 + $0x3a8] sm:$0xff] }
  0xd2   : > { %741 = vmatmul.f32.gmra.mxu2 %v707_v51  ;;  %1122 = vmatpush.msrb.mxu3 %v1101_v62  ;;  %v1303_v62 = vld [vmem:[#allocation10 + $0x3c8] sm:$0xff] }
  0xd3   : > { %1247 = vmatpush.msra.mxu1 %v1240_v35  ;;  %1181 = vmatpush.msra.mxu0 %v1174_v33  ;;  %v1231_v33 = vld [vmem:[#allocation10 + $0x318] sm:$0xff] }
  0xd4   : > { %1123 = vmatpush.msrb.mxu3 %v1100_v15  ;;  %1313 = vmatpush.msra.mxu2 %v1306_v36 }
  0xd5   : > { %1248 = vmatpush.msra.mxu1 %v1239_v44 }
  0xd6   : > { %1124 = vmatpush.msrb.mxu3 %v1099_v24  ;;  %1314 = vmatpush.msra.mxu2 %v1305_v45  ;;  %v1168_v24 = vld [vmem:[#allocation10 + $0x2b0] sm:$0xff] }
  0xd8   : > { %1125 = vmatpush.msrb.mxu3 %v1098_v42  ;;  %v1297_v42 = vld [vmem:[#allocation10 + $0x398] sm:$0xff] }
  0xda   : > { %744 = vmatmul.f32.gmra.mxu2 %v708_v59 }
  0xe2   : > { %747 = vmatmul.f32.gmra.mxu2 %v709_v61 }
 0x126   : > { %v656_v37 = vpop.f32.mrf.mxu0 }
 0x127   : > { %v657_v38 = vadd.f32 %v2889_v34, %v656_v37  ;;  %v689_v39 = vpop.f32.mrf.mxu1 }
 0x128   : > { %v2898_v41 = vadd.f32 %v2889_v34, %v689_v39 }
 0x129   : > { %v662_v43 = vmax.f32 %v657_v38, 0.0 }
 0x12a   : > { %v695_v12 = vmax.f32 %v2898_v41, 0.0 }
 0x12b   : > { %1824 = vmatmul.msk.f32.vlgmr.msra.gmra.mxu3 %vm2893_vm0, %v662_v43  ;;  %v2913_v56 = vsel %vm2893_vm0, %v662_v43, 0.0  ;;  %v1173_v43 = vld [vmem:[#allocation10 + $0x2d8] sm:$0xff] }
 0x12c   : > { %v807_v63 = vrot.slane %v2913_v56, 1  ;;  %v764_v3 = vrot.slane %v2913_v56, 7  ;;  %v2977_v25 = vsel %vm2915_vm1, %v695_v12, 0.0  ;;  %1182 = vmatpush.msra.mxu0 %v1173_v43  ;;  %v1230_v43 = vld [vmem:[#allocation10 + $0x310] sm:$0xff] }
 0x12d   : > { %v727_v46 = vpop.f32.mrf.mxu2  ;;  %v774_v37 = vrot.slane %v2977_v25, 7  ;;  %v817_v38 = vrot.slane %v2977_v25, 1  ;;  %v1364_v25 = vld [vmem:[#allocation10 + $0x420] sm:$0xff] }
 0x12e   : > { %v728_v48 = vadd.f32 %v2889_v34, %v727_v46  ;;  %v659_v49 = vpop.f32.mrf.mxu0  ;;  %v1238_v46 = vld [vmem:[#allocation10 + $0x350] sm:$0xff] }
 0x12f   : > { %v660_v50 = vadd.f32 %v2889_v34, %v659_v49  ;;  %v692_v51 = vpop.f32.mrf.mxu1  ;;  %v1172_v49 = vld [vmem:[#allocation10 + $0x2d0] sm:$0xff]  ;;  %1249 = vmatpush.msra.mxu1 %v1238_v46 }
 0x130   : > { %v2906_v53 = vmax.f32 %v728_v48, 0.0  ;;  %v2909_v54 = vadd.f32 %v2889_v34, %v692_v51  ;;  %v1097_v51 = vld [vmem:[#allocation10 + $0x208] sm:$0xff]  ;;  %1183 = vmatpush.msra.mxu0 %v1172_v49  ;;  %v1296_v46 = vld [vmem:[#allocation10 + $0x390] sm:$0xff]  ;;  %v1165_v49 = vld [vmem:[#allocation10 + $0x298] sm:$0xff] }
 0x131   : > { %v663_v58 = vmax.f32 %v660_v50, 0.0  ;;  %v1304_v50 = vld [vmem:[#allocation10 + $0x3d0] sm:$0xff]  ;;  %1126 = vmatpush.msrb.mxu3 %v1097_v51  ;;  %v1295_v51 = vld [vmem:[#allocation10 + $0x388] sm:$0xff] }
 0x132   : > { %v696_v59 = vmax.f32 %v2909_v54, 0.0  ;;  %v766_v60 = vrot.slane %v2906_v53, 7  ;;  %v809_v21 = vrot.slane %v2906_v53, 1  ;;  %1315 = vmatpush.msra.mxu2 %v1304_v50  ;;  %v1229_v50 = vld [vmem:[#allocation10 + $0x308] sm:$0xff] }
 0x133   : > { %v2923_v61 = vsel %vm2893_vm0, %v663_v58, 0.0  ;;  %1825 = vmatmul.msk.f32.gmra.mxu3 %vm2893_vm0, %v663_v58 }
 0x134   : > { %v765_v0 = vrot.slane %v2923_v61, 7  ;;  %v808_v1 = vrot.slane %v2923_v61, 1  ;;  %v2937_v2 = vsel %vm2915_vm1, %v696_v59, 0.0  ;;  %1316 = vmatpush.msra.mxu2 %v1303_v62  ;;  %v1372_v62 = vld [vmem:[#allocation10 + $0x460] sm:$0xff] }
 0x135   : > { %v775_v4 = vrot.slane %v2937_v2, 7  ;;  %v818_v5 = vrot.slane %v2937_v2, 1  ;;  %v730_v6 = vpop.f32.mrf.mxu2  ;;  %v1236_v2 = vld [vmem:[#allocation10 + $0x340] sm:$0xff] }
 0x136   : > { %v731_v7 = vadd.f32 %v2889_v34, %v730_v6  ;;  %v830_v8 = vsel %vm819_vm4, %v807_v63, %v808_v1  ;;  %v2947_v9 = vsel %vm776_vm2, %v765_v0, %v766_v60  ;;  %v829_v32 = vsel %vm819_vm4, %v808_v1, %v809_v21  ;;  %v1171_v1 = vld [vmem:[#allocation10 + $0x2c8] sm:$0xff]  ;;  %v1096_v6 = vld [vmem:[#allocation10 + $0x200] sm:$0xff] }
 0x137   : > { %v788_v10 = vsel %vm776_vm2, %v775_v4, %v764_v3  ;;  %996 = vmatmul.f32.vlgmr.msrb.gmra.mxu1 %v830_v8  ;;  %1843 = vmatmul.msk.f32.vlgmr.msrb.gmra.mxu2 %vm1888_vm3, %v2947_v9  ;;  %v2960_v11 = vsel %vm819_vm4, %v818_v5, %v807_v63  ;;  %v787_v39 = vsel %vm776_vm2, %v764_v3, %v765_v0  ;;  %v1302_v3 = vld [vmem:[#allocation10 + $0x3c0] sm:$0xff]  ;;  %v1301_v8 = vld [vmem:[#allocation10 + $0x3b8] sm:$0xff] }
 0x138   : > { %v2963_v13 = vmax.f32 %v731_v7, 0.0  ;;  %1827 = vmatmul.msk.f32.vlgmr.msrb.gmra.mxu0 %vm1888_vm3, %v788_v10  ;;  %v3005_v55 = vsel %vm776_vm2, %v774_v37, %v775_v4  ;;  %v3013_v56 = vsel %vm819_vm4, %v817_v38, %v818_v5  ;;  %v1170_v5 = vld [vmem:[#allocation10 + $0x2c0] sm:$0xff]  ;;  %v1235_v7 = vld [vmem:[#allocation10 + $0x338] sm:$0xff]  ;;  %1317 = vmatpush.msra.mxu2 %v1302_v3 }
 0x139   : > { %1184 = vmatpush.msra.mxu0 %v1171_v1  ;;  %1127 = vmatpush.msrb.mxu3 %v1096_v6  ;;  %v1294_v1 = vld [vmem:[#allocation10 + $0x380] sm:$0xff]  ;;  %v1371_v6 = vld [vmem:[#allocation10 + $0x458] sm:$0xff] }
 0x13a   : > { %v767_v22 = vrot.slane %v2963_v13, 7  ;;  %v810_v47 = vrot.slane %v2963_v13, 1  ;;  %1318 = vmatpush.msra.mxu2 %v1301_v8 }
 0x13b   : > { %903 = vmatmul.f32.gmra.mxu3 %v2906_v53  ;;  %1185 = vmatpush.msra.mxu0 %v1170_v5  ;;  %v1163_v5 = vld [vmem:[#allocation10 + $0x288] sm:$0xff] }
 0x13c   : > { %v2982_v26 = vsel %vm776_vm2, %v766_v60, %v767_v22  ;;  %v1237_v60 = vld [vmem:[#allocation10 + $0x348] sm:$0xff]  ;;  %v3022_v0 = vsel %vm819_vm4, %v809_v21, %v810_v47  ;;  %1319 = vmatpush.msra.mxu2 %v1300_v18  ;;  %v1370_v18 = vld [vmem:[#allocation10 + $0x450] sm:$0xff] }
 0x13d   : > { %v733_v30 = vpop.f32.mrf.mxu2  ;;  %1250 = vmatpush.msra.mxu1 %v1237_v60  ;;  %1186 = vmatpush.msra.mxu0 %v1169_v16  ;;  %v1233_v21 = vld [vmem:[#allocation10 + $0x328] sm:$0xff]  ;;  %v1162_v16 = vld [vmem:[#allocation10 + $0x280] sm:$0xff] }
 0x13e   : > { %v734_v31 = vadd.f32 %v2889_v34, %v733_v30  ;;  %v1167_v30 = vld [vmem:[#allocation10 + $0x2a8] sm:$0xff]  ;;  %1320 = vmatpush.msra.mxu2 %v1299_v27 }
 0x13f   : > { %1835 = vmatmul.msk.f32.gmra.mxu1 %vm1889_vm5, %v829_v32  ;;  %1065 = vmatmul.f32.gmra.mxu2 %v2982_v26  ;;  %v1298_v32 = vld [vmem:[#allocation10 + $0x3a0] sm:$0xff] }
 0x140   : > { %v2994_v40 = vmax.f32 %v734_v31, 0.0  ;;  %941 = vmatmul.f32.gmra.mxu0 %v787_v39  ;;  %1251 = vmatpush.msra.mxu1 %v1236_v2  ;;  %v1374_v31 = vld [vmem:[#allocation10 + $0x470] sm:$0xff]  ;;  %v1166_v39 = vld [vmem:[#allocation10 + $0x2a0] sm:$0xff] }
 0x141   : > { %1187 = vmatpush.msra.mxu0 %v1168_v24  ;;  %1321 = vmatpush.msra.mxu2 %v1298_v32 }
 0x142   : > { %v768_v48 = vrot.slane %v2994_v40, 7  ;;  %v811_v10 = vrot.slane %v2994_v40, 1  ;;  %1252 = vmatpush.msra.mxu1 %v1235_v7 }
 0x143   : > { %906 = vmatmul.f32.gmra.mxu3 %v2963_v13  ;;  %1188 = vmatpush.msra.mxu0 %v1167_v30 }
 0x144   : > { %v3017_v58 = vsel %vm776_vm2, %v767_v22, %v768_v48  ;;  %v3043_v23 = vsel %vm819_vm4, %v810_v47, %v811_v10  ;;  %1253 = vmatpush.msra.mxu1 %v1234_v17  ;;  %1322 = vmatpush.msra.mxu2 %v1297_v42 }
 0x145   : > { %v736_v61 = vpop.f32.mrf.mxu2  ;;  %1189 = vmatpush.msra.mxu0 %v1166_v39 }
 0x146   : > { %v737_v63 = vadd.f32 %v2889_v34, %v736_v61  ;;  %1254 = vmatpush.msra.mxu1 %v1233_v21  ;;  %v1164_v61 = vld [vmem:[#allocation10 + $0x290] sm:$0xff]  ;;  %1323 = vmatpush.msra.mxu2 %v1296_v46  ;;  %v1369_v21 = vld [vmem:[#allocation10 + $0x448] sm:$0xff] }
 0x147   : > { %1002 = vmatmul.f32.gmra.mxu1 %v3022_v0  ;;  %1845 = vmatmul.msk.f32.gmra.mxu2 %vm1888_vm3, %v3017_v58 }
 0x148   : > { %v3028_v4 = vmax.f32 %v737_v63, 0.0  ;;  %1829 = vmatmul.msk.f32.gmra.mxu0 %vm1888_vm3, %v2947_v9  ;;  %v1375_v9 = vld [vmem:[#allocation10 + $0x478] sm:$0xff]  ;;  %1255 = vmatpush.msra.mxu1 %v1232_v28  ;;  %v1228_v63 = vld [vmem:[#allocation10 + $0x300] sm:$0xff] }
 0x149   : > { %1376 = vmatpush.msra.mxu3 %v1375_v9  ;;  %1190 = vmatpush.msra.mxu0 %v1165_v49 }
 0x14a   : > { %v769_v15 = vrot.slane %v3028_v4, 7  ;;  %v812_v35 = vrot.slane %v3028_v4, 1  ;;  %1256 = vmatpush.msra.mxu1 %v1231_v33  ;;  %1324 = vmatpush.msra.mxu2 %v1295_v51 }
 0x14b   : > { %909 = vmatmul.f32.gmra.mxu3 %v2994_v40  ;;  %1191 = vmatpush.msra.mxu0 %v1164_v61 }
 0x14c   : > { %v3038_v19 = vsel %vm776_vm2, %v768_v48, %v769_v15  ;;  %1377 = vmatpush.msra.mxu3 %v1374_v31  ;;  %v3062_v48 = vsel %vm819_vm4, %v811_v10, %v812_v35  ;;  %1257 = vmatpush.msra.mxu1 %v1230_v43  ;;  %v1368_v31 = vld [vmem:[#allocation10 + $0x440] sm:$0xff] }
 0x14d   : > { %v739_v20 = vpop.f32.mrf.mxu2  ;;  %1325 = vmatpush.msra.mxu2 %v1294_v1  ;;  %1192 = vmatpush.msra.mxu0 %v1163_v5  ;;  %v1458_v1 = vld [vmem:[#allocation13 + $0x68] sm:$0xff] }
 0x14e   : > { %v740_v22 = vadd.f32 %v2889_v34, %v739_v20  ;;  %1258 = vmatpush.msra.mxu1 %v1229_v50 }
 0x14f   : > { %1837 = vmatmul.msk.f32.gmra.mxu1 %vm1889_vm5, %v3043_v23  ;;  %1071 = vmatmul.f32.gmra.mxu2 %v3038_v19 }
 0x150   : > { %v3049_v29 = vmax.f32 %v740_v22, 0.0  ;;  %947 = vmatmul.f32.gmra.mxu0 %v2982_v26  ;;  %v1373_v26 = vld [vmem:[#allocation10 + $0x468] sm:$0xff]  ;;  %1259 = vmatpush.msra.mxu1 %v1228_v63 }
 0x151   : > { %1378 = vmatpush.msra.mxu3 %v1373_v26  ;;  %1193 = vmatpush.msra.mxu0 %v1162_v16 }
 0x152   : > { %v770_v36 = vrot.slane %v3049_v29, 7  ;;  %v813_v2 = vrot.slane %v3049_v29, 1 }
 0x153   : > { %912 = vmatmul.f32.gmra.mxu3 %v3028_v4 }
 0x154   : > { %v3057_v44 = vsel %vm776_vm2, %v769_v15, %v770_v36  ;;  %1379 = vmatpush.msra.mxu3 %v1372_v62  ;;  %v3083_v15 = vsel %vm819_vm4, %v812_v35, %v813_v2  ;;  %v1367_v35 = vld [vmem:[#allocation10 + $0x438] sm:$0xff] }
 0x155   : > { %v742_v45 = vpop.f32.mrf.mxu2 }
 0x156   : > { %v743_v47 = vadd.f32 %v2889_v34, %v742_v45  ;;  %1380 = vmatpush.msra.mxu3 %v1371_v6 }
 0x157   : > { %1008 = vmatmul.f32.gmra.mxu1 %v3062_v48  ;;  %1847 = vmatmul.msk.f32.gmra.mxu2 %vm1888_vm3, %v3057_v44 }
 0x158   : > { %v3068_v60 = vmax.f32 %v743_v47, 0.0  ;;  %1831 = vmatmul.msk.f32.gmra.mxu0 %vm1888_vm3, %v3017_v58  ;;  %1381 = vmatpush.msra.mxu3 %v1370_v18 }
 0x15a   : > { %v771_v3 = vrot.slane %v3068_v60, 7  ;;  %v814_v9 = vrot.slane %v3068_v60, 1  ;;  %1382 = vmatpush.msra.mxu3 %v1369_v21 }
 0x15b   : > { %915 = vmatmul.f32.gmra.mxu3 %v3049_v29 }
 0x15c   : > { %v3078_v7 = vsel %vm776_vm2, %v770_v36, %v771_v3  ;;  %v3100_v28 = vsel %vm819_vm4, %v813_v2, %v814_v9  ;;  %1383 = vmatpush.msra.mxu3 %v1368_v31  ;;  %v1519_v2 = vld [vmem:[#allocation11 + $0x68] sm:$0xff]  ;;  %v1452_v31 = vld [vmem:[#allocation13 + $0x38] sm:$0xff] }
 0x15d   : > { %v745_v8 = vpop.f32.mrf.mxu2 }
 0x15e   : > { %v746_v10 = vadd.f32 %v2889_v34, %v745_v8  ;;  %1384 = vmatpush.msra.mxu3 %v1367_v35  ;;  %v1518_v8 = vld [vmem:[#allocation11 + $0x60] sm:$0xff]  ;;  %v1451_v35 = vld [vmem:[#allocation13 + $0x30] sm:$0xff] }
 0x15f   : > { %1839 = vmatmul.msk.f32.gmra.mxu1 %vm1889_vm5, %v3083_v15  ;;  %1077 = vmatmul.f32.gmra.mxu2 %v3078_v7 }
 0x160   : > { %v3089_v17 = vmax.f32 %v746_v10, 0.0  ;;  %953 = vmatmul.f32.gmra.mxu0 %v3038_v19  ;;  %v1456_v10 = vld [vmem:[#allocation13 + $0x58] sm:$0xff] }
 0x162   : > { %v772_v20 = vrot.slane %v3089_v17, 7  ;;  %v815_v32 = vrot.slane %v3089_v17, 1 }
 0x163   : > { %918 = vmatmul.f32.gmra.mxu3 %v3068_v60 }
 0x164   : > { %v780_v22 = vsel %vm776_vm2, %v771_v3, %v772_v20  ;;  %v823_v43 = vsel %vm819_vm4, %v814_v9, %v815_v32  ;;  %v1455_v9 = vld [vmem:[#allocation13 + $0x50] sm:$0xff] }
 0x165   : > { %v748_v24 = vpop.f32.mrf.mxu2 }
 0x166   : > { %v749_v27 = vadd.f32 %v2889_v34, %v748_v24  ;;  %v1515_v24 = vld [vmem:[#allocation11 + $0x48] sm:$0xff] }
 0x167   : > { %1014 = vmatmul.f32.gmra.mxu1 %v3100_v28  ;;  %1849 = vmatmul.msk.f32.gmra.mxu2 %vm1888_vm3, %v780_v22 }
 0x168   : > { %v758_v30 = vmax.f32 %v749_v27, 0.0  ;;  %1833 = vmatmul.msk.f32.gmra.mxu0 %vm1888_vm3, %v3057_v44  ;;  %v1453_v27 = vld [vmem:[#allocation13 + $0x40] sm:$0xff] }
 0x16a   : > { %v773_v33 = vrot.slane %v758_v30, 7  ;;  %v816_v34 = vrot.slane %v758_v30, 1 }
 0x16b   : > { %1128 = vmatmul.f32.vlgmr.msrb.gmra.mxu3 %v2906_v53  ;;  %v1366_v53 = vld [vmem:[#allocation10 + $0x430] sm:$0xff] }
 0x16c   : > { %v779_v36 = vsel %vm776_vm2, %v772_v20, %v773_v33  ;;  %v778_v39 = vsel %vm776_vm2, %v773_v33, %v774_v37  ;;  %v3120_v42 = vsel %vm819_vm4, %v816_v34, %v817_v38  ;;  %1385 = vmatpush.msra.mxu3 %v1366_v53  ;;  %v1365_v37 = vld [vmem:[#allocation10 + $0x428] sm:$0xff]  ;;  %v1363_v38 = vld [vmem:[#allocation10 + $0x418] sm:$0xff]  ;;  %v1516_v20 = vld [vmem:[#allocation11 + $0x50] sm:$0xff] }
 0x16d   : > { %v1449_v53 = vld [vmem:[#allocation13 + $0x20] sm:$0xff] }
 0x16e   : > { %1386 = vmatpush.msra.mxu3 %v1365_v37  ;;  %v1510_v37 = vld [vmem:[#allocation11 + $0x20] sm:$0xff] }
 0x16f   : > { %1841 = vmatmul.msk.f32.gmra.mxu1 %vm1889_vm5, %v823_v43  ;;  %1083 = vmatmul.f32.gmra.mxu2 %v779_v36 }
 0x170   : > { %959 = vmatmul.f32.gmra.mxu0 %v3078_v7  ;;  %1387 = vmatpush.msra.mxu3 %v1364_v25 }
 0x172   : > { %1388 = vmatpush.msra.mxu3 %v1363_v38  ;;  %v1448_v38 = vld [vmem:[#allocation13 + $0x18] sm:$0xff] }
 0x173   : > { %1131 = vmatmul.f32.gmra.mxu3 %v2963_v13  ;;  %v1362_v13 = vld [vmem:[#allocation10 + $0x410] sm:$0xff] }
 0x174   : > { %1389 = vmatpush.msra.mxu3 %v1362_v13  ;;  %v1509_v13 = vld [vmem:[#allocation11 + $0x18] sm:$0xff] }
 0x177   : > { %1859 = vmatmul.msk.f32.vlgmr.msra.gmra.mxu1 %vm1888_vm3, %v3017_v58  ;;  %1326 = vmatmul.f32.vlgmr.msra.gmra.mxu2 %v2994_v40  ;;  %v1361_v58 = vld [vmem:[#allocation10 + $0x408] sm:$0xff] }
 0x178   : > { %1194 = vmatmul.f32.vlgmr.msra.gmra.mxu0 %v3022_v0  ;;  %1390 = vmatpush.msra.mxu3 %v1361_v58  ;;  %v822_v0 = vsel %vm819_vm4, %v815_v32, %v816_v34  ;;  %v1513_v32 = vld [vmem:[#allocation11 + $0x38] sm:$0xff]  ;;  %v1447_v58 = vld [vmem:[#allocation13 + $0x10] sm:$0xff] }
 0x17b   : > { %1134 = vmatmul.f32.gmra.mxu3 %v2994_v40  ;;  %v1360_v40 = vld [vmem:[#allocation10 + $0x400] sm:$0xff] }
 0x17c   : > { %1391 = vmatpush.msra.mxu3 %v1360_v40  ;;  %v1508_v40 = vld [vmem:[#allocation11 + $0x10] sm:$0xff] }
 0x17f   : > { %1263 = vmatmul.f32.gmra.mxu1 %v3038_v19  ;;  %1329 = vmatmul.f32.gmra.mxu2 %v3028_v4 }
 0x180   : > { %1851 = vmatmul.msk.f32.gmra.mxu0 %vm1889_vm5, %v3043_v23 }
 0x183   : > { %1137 = vmatmul.f32.gmra.mxu3 %v3028_v4 }
 0x187   : > { %1861 = vmatmul.msk.f32.gmra.mxu1 %vm1888_vm3, %v3057_v44  ;;  %1332 = vmatmul.f32.gmra.mxu2 %v3049_v29 }
 0x188   : > { %1200 = vmatmul.f32.gmra.mxu0 %v3062_v48 }
 0x18b   : > { %1140 = vmatmul.f32.gmra.mxu3 %v3049_v29 }
 0x18f   : > { %1269 = vmatmul.f32.gmra.mxu1 %v3078_v7  ;;  %1335 = vmatmul.f32.gmra.mxu2 %v3068_v60  ;;  %v1457_v7 = vld [vmem:[#allocation13 + $0x60] sm:$0xff] }
 0x190   : > { %1853 = vmatmul.msk.f32.gmra.mxu0 %vm1889_vm5, %v3083_v15 }
 0x193   : > { %1143 = vmatmul.f32.gmra.mxu3 %v3068_v60  ;;  %v1460_v60 = vld [vmem:[#allocation13 + $0x78] sm:$0xff] }
 0x194   : > { %1465 = vmatpush.msrb.mxu0 %v1460_v60  ;;  %1890 = vmatpush.msrb.mxu2 %v1460_v60 }
 0x196   : > { %1466 = vmatpush.msrb.mxu0 %v1459_v14  ;;  %1891 = vmatpush.msrb.mxu2 %v1459_v14  ;;  %v1507_v14 = vld [vmem:[#allocation11 + $0x8] sm:$0xff] }
 0x197   : > { %1863 = vmatmul.msk.f32.gmra.mxu1 %vm1888_vm3, %v780_v22  ;;  %1338 = vmatmul.f32.gmra.mxu2 %v3089_v17  ;;  %v1454_v22 = vld [vmem:[#allocation13 + $0x48] sm:$0xff] }
 0x198   : > { %1206 = vmatmul.f32.gmra.mxu0 %v3100_v28  ;;  %1892 = vmatpush.msrb.mxu2 %v1458_v1 }
 0x199   : > { %1467 = vmatpush.msrb.mxu0 %v1458_v1  ;;  %v1506_v1 = vld [vmem:[#allocation11] sm:$0xff] }
 0x19a   : > { %1893 = vmatpush.msrb.mxu2 %v1457_v7 }
 0x19b   : > { %1146 = vmatmul.f32.gmra.mxu3 %v3089_v17  ;;  %1468 = vmatpush.msrb.mxu0 %v1457_v7 }
 0x19c   : > { %1894 = vmatpush.msrb.mxu2 %v1456_v10 }
 0x19d   : > { %1469 = vmatpush.msrb.mxu0 %v1456_v10  ;;  %v2108_v10 = vld [vmem:[%s2838_s22 + $0x30] sm:$0xff] }
 0x19e   : > { %1895 = vmatpush.msrb.mxu2 %v1455_v9 }
 0x19f   : > { %1275 = vmatmul.f32.gmra.mxu1 %v779_v36  ;;  %1341 = vmatmul.f32.gmra.mxu2 %v758_v30  ;;  %v1512_v36 = vld [vmem:[#allocation11 + $0x30] sm:$0xff] }
 0x1a0   : > { %1855 = vmatmul.msk.f32.gmra.mxu0 %vm1889_vm5, %v823_v43  ;;  %1896 = vmatpush.msrb.mxu2 %v1454_v22 }
 0x1a1   : > { %1470 = vmatpush.msrb.mxu0 %v1455_v9 }
 0x1a2   : > { %1897 = vmatpush.msrb.mxu2 %v1453_v27 }
 0x1a3   : > { %1149 = vmatmul.f32.gmra.mxu3 %v758_v30  ;;  %1471 = vmatpush.msrb.mxu0 %v1454_v22 }
 0x1a4   : > { %1898 = vmatpush.msrb.mxu2 %v1452_v31 }
 0x1a5   : > { %1472 = vmatpush.msrb.mxu0 %v1453_v27  ;;  %v2110_v27 = vld [vmem:[%s2838_s22 + $0x38] sm:$0xff] }
 0x1a6   : > { %1899 = vmatpush.msrb.mxu2 %v1451_v35 }
 0x1a7   : > { %1865 = vmatmul.msk.f32.gmra.mxu1 %vm1888_vm3, %v778_v39  ;;  %1866 = vmatmul.msk.f32.gmra.mxu2 %vm2915_vm1, %v695_v12  ;;  %v1450_v39 = vld [vmem:[#allocation13 + $0x28] sm:$0xff] }
 0x1a8   : > { %1212 = vmatmul.f32.gmra.mxu0 %v822_v0  ;;  %1900 = vmatpush.msrb.mxu2 %v1450_v39 }
 0x1a9   : > { %1473 = vmatpush.msrb.mxu0 %v1452_v31 }
 0x1aa   : > { %1901 = vmatpush.msrb.mxu2 %v1449_v53 }
 0x1ab   : > { %1392 = vmatmul.f32.vlgmr.msra.gmra.mxu3 %v3062_v48  ;;  %1474 = vmatpush.msrb.mxu0 %v1451_v35 }
 0x1ac   : > { %1902 = vmatpush.msrb.mxu2 %v1448_v38 }
 0x1ad   : > { %1475 = vmatpush.msrb.mxu0 %v1450_v39 }
 0x1ae   : > { %v3168_v4 = vpop.f32.mrf.mxu3  ;;  %1903 = vmatpush.msrb.mxu2 %v1447_v58 }
 0x1af   : > { %1281 = vmatmul.f32.gmra.mxu1 %v3005_v55  ;;  %1867 = vmatmul.msk.f32.gmra.mxu2 %vm2915_vm1, %v696_v59 }
 0x1b0   : > { %1857 = vmatmul.msk.f32.gmra.mxu0 %vm1889_vm5, %v3120_v42 }
 0x1b1   : > { %1476 = vmatpush.msrb.mxu0 %v1449_v53 }
 0x1b3   : > { %1869 = vmatmul.msk.f32.gmra.mxu3 %vm1889_vm5, %v3083_v15  ;;  %v1517_v15 = vld [vmem:[#allocation11 + $0x58] sm:$0xff]  ;;  %1477 = vmatpush.msrb.mxu0 %v1448_v38 }
 0x1b4   : > { %v3192_v59 = vpop.f32.mrf.mxu1 }
 0x1b5   : > { %v3188_v54 = vpop.f32.mrf.mxu0  ;;  %1478 = vmatpush.msrb.mxu0 %v1447_v58 }
 0x1b6   : > { %v3181_v41 = vpop.f32.mrf.mxu3 }
 0x1ba   : > { %v3194_v12 = vpop.f32.mrf.mxu2 }
 0x1bb   : > { %1398 = vmatmul.f32.gmra.mxu3 %v3100_v28  ;;  %v1514_v28 = vld [vmem:[#allocation11 + $0x40] sm:$0xff] }
 0x1bc   : > { %v3203_v23 = vpop.f32.mrf.mxu1 }
 0x1bd   : > { %v3198_v19 = vpop.f32.mrf.mxu0 }
 0x1be   : > { %v3184_v52 = vpop.f32.mrf.mxu3  ;;  %v943_v35 = vadd.f32 %v3198_v19, %v3181_v41 }
 0x1c2   : > { %v3205_v29 = vpop.f32.mrf.mxu2 }
 0x1c3   : > { %1871 = vmatmul.msk.f32.gmra.mxu3 %vm1889_vm5, %v823_v43 }
 0x1c4   : > { %v3214_v46 = vpop.f32.mrf.mxu1 }
 0x1c5   : > { %v3209_v44 = vpop.f32.mrf.mxu0 }
 0x1c6   : > { %v3190_v57 = vpop.f32.mrf.mxu3 }
 0x1ca   : > { %v3216_v47 = vpop.f32.mrf.mxu2 }
 0x1cb   : > { %1404 = vmatmul.f32.gmra.mxu3 %v822_v0 }
 0x1cc   : > { %v3225_v50 = vpop.f32.mrf.mxu1 }
 0x1cd   : > { %v3221_v48 = vpop.f32.mrf.mxu0 }
 0x1ce   : > { %v3196_v55 = vpop.f32.mrf.mxu3 }
 0x1d2   : > { %v3227_v51 = vpop.f32.mrf.mxu2 }
 0x1d3   : > { %1873 = vmatmul.msk.f32.gmra.mxu3 %vm1889_vm5, %v3120_v42  ;;  %v1511_v42 = vld [vmem:[#allocation11 + $0x28] sm:$0xff] }
 0x1d4   : > { %v3233_v63 = vpop.f32.mrf.mxu1 }
 0x1d5   : > { %v3229_v61 = vpop.f32.mrf.mxu0 }
 0x1d6   : > { %v3207_v26 = vpop.f32.mrf.mxu3 }
 0x1da   : > { %v3235_v3 = vpop.f32.mrf.mxu2 }
 0x1db   : > { %1410 = vmatmul.f32.gmra.mxu3 %v3013_v56  ;;  %v1521_v56 = vld [vmem:[#allocation11 + $0x78] sm:$0xff] }
 0x1dc   : > { %1526 = vmatpush.msrb.mxu1 %v1521_v56  ;;  %1906 = vmatpush.msrb.mxu3 %v1521_v56  ;;  %v3241_v16 = vpop.f32.mrf.mxu1  ;;  %v1446_v56 = vld [vmem:[#allocation13 + $0x8] sm:$0xff] }
 0x1dd   : > { %v3239_v6 = vpop.f32.mrf.mxu0  ;;  %1479 = vmatpush.msrb.mxu0 %v1446_v56  ;;  %1904 = vmatpush.msrb.mxu2 %v1446_v56 }
 0x1de   : > { %v3212_v45 = vpop.f32.mrf.mxu3 }
 0x1e2   : > { %v3243_v17 = vpop.f32.mrf.mxu2 }
 0x1e3   : > { %1875 = vmatmul.msk.f32.gmra.mxu3 %vm1889_vm5, %v2960_v11  ;;  %v1520_v11 = vld [vmem:[#allocation11 + $0x70] sm:$0xff] }
 0x1e4   : > { %1527 = vmatpush.msrb.mxu1 %v1520_v11  ;;  %1907 = vmatpush.msrb.mxu3 %v1520_v11  ;;  %v3251_v33 = vpop.f32.mrf.mxu1  ;;  %v1445_v11 = vld [vmem:[#allocation13] sm:$0xff] }
 0x1e5   : > { %v3247_v21 = vpop.f32.mrf.mxu0  ;;  %1480 = vmatpush.msrb.mxu0 %v1445_v11  ;;  %1905 = vmatpush.msrb.mxu2 %v1445_v11 }
 0x1e6   : > { %v3223_v49 = vpop.f32.mrf.mxu3  ;;  %1528 = vmatpush.msrb.mxu1 %v1519_v2  ;;  %1908 = vmatpush.msrb.mxu3 %v1519_v2 }
 0x1e7   : > { %1499 = vmatmul.f32.vlgmr.msrb.gmra.mxu2 %v2108_v10 }
 0x1e8   : > { %1529 = vmatpush.msrb.mxu1 %v1518_v8  ;;  %1909 = vmatpush.msrb.mxu3 %v1518_v8  ;;  %v2107_v8 = vld [vmem:[%s2838_s22] sm:$0xff] }
 0x1e9   : > { %1481 = vmatmul.f32.vlgmr.msrb.gmra.mxu0 %v2107_v8  ;;  %v949_v8 = vadd.f32 %v3221_v48, %v3190_v57  ;;  %v952_v48 = vadd.f32 %v3229_v61, %v3196_v55  ;;  %v955_v61 = vadd.f32 %v3239_v6, %v3207_v26 }
 0x1ea   : > { %1530 = vmatpush.msrb.mxu1 %v1517_v15  ;;  %1910 = vmatpush.msrb.mxu3 %v1517_v15  ;;  %v3253_v34 = vpop.f32.mrf.mxu2 }
 0x1ec   : > { %1531 = vmatpush.msrb.mxu1 %v1516_v20  ;;  %1911 = vmatpush.msrb.mxu3 %v1516_v20  ;;  %v3259_v0 = vpop.f32.mrf.mxu1  ;;  %v940_v20 = vadd.f32 %v3188_v54, %v3168_v4  ;;  %v2111_v54 = vld [vmem:[%s2838_s22 + $0x10] sm:$0xff] }
 0x1ed   : > { %v3255_v43 = vpop.f32.mrf.mxu0 }
 0x1ee   : > { %v3231_v62 = vpop.f32.mrf.mxu3  ;;  %1532 = vmatpush.msrb.mxu1 %v1515_v24  ;;  %1912 = vmatpush.msrb.mxu3 %v1515_v24  ;;  %v2109_v24 = vld [vmem:[%s2838_s22 + $0x8] sm:$0xff]  ;;  %v1021_v31 = vadd.f32 %v3192_v59, %v940_v20  ;;  %v2113_v20 = vld [vmem:[%s2838_s22 + $0x20] sm:$0xff] }
 0x1ef   : > { %1502 = vmatmul.f32.gmra.mxu2 %v2110_v27  ;;  %v1024_v27 = vadd.f32 %v3225_v50, %v949_v8 }
 0x1f0   : > { %1533 = vmatpush.msrb.mxu1 %v1514_v28  ;;  %1913 = vmatpush.msrb.mxu3 %v1514_v28 }
 0x1f1   : > { %1484 = vmatmul.f32.gmra.mxu0 %v2109_v24 }
 0x1f2   : > { %1534 = vmatpush.msrb.mxu1 %v1513_v32  ;;  %1914 = vmatpush.msrb.mxu3 %v1513_v32  ;;  %v3261_v60 = vpop.f32.mrf.mxu2  ;;  %v1087_v32 = vadd.f32 %v3194_v12, %v1021_v31  ;;  %v946_v12 = vadd.f32 %v3209_v44, %v3184_v52 }
 0x1f4   : > { %1535 = vmatpush.msrb.mxu1 %v1512_v36  ;;  %1915 = vmatpush.msrb.mxu3 %v1512_v36  ;;  %v1261_v15 = vpop.f32.mrf.mxu1  ;;  %v1153_v36 = vadd.f32 %v3231_v62, %v1087_v32  ;;  %v3289_v62 = vld [vmem:[%s3515_s14] ss:$0 sm:$0xff]  ;;  %v1023_v11 = vadd.f32 %v3214_v46, %v946_v12  ;;  %v1090_v32 = vadd.f32 %v3227_v51, %v1024_v27 }
 0x1f5   : > { %v1195_v2 = vpop.f32.mrf.mxu0 }
 0x1f6   : > { %v3237_v5 = vpop.f32.mrf.mxu3  ;;  %1536 = vmatpush.msrb.mxu1 %v1511_v42  ;;  %1916 = vmatpush.msrb.mxu3 %v1511_v42  ;;  %v1219_v53 = vadd.f32 %v1195_v2, %v1153_v36  ;;  %v1089_v44 = vadd.f32 %v3216_v47, %v1023_v11  ;;  %v958_v11 = vadd.f32 %v3247_v21, %v3212_v45 }
 0x1f7   : > { %v961_v45 = vadd.f32 %v3255_v43, %v3223_v49 }
 0x1f8   : > { %1537 = vmatpush.msrb.mxu1 %v1510_v37  ;;  %1917 = vmatpush.msrb.mxu3 %v1510_v37  ;;  %v1022_v37 = vadd.f32 %v3203_v23, %v943_v35 }
 0x1f9   : > { %1487 = vmatmul.f32.gmra.mxu0 %v2111_v54  ;;  %v2114_v54 = vld [vmem:[%s2838_s22 + $0x28] sm:$0xff] }
 0x1fa   : > { %1538 = vmatpush.msrb.mxu1 %v1509_v13  ;;  %1918 = vmatpush.msrb.mxu3 %v1509_v13  ;;  %v1327_v9 = vpop.f32.mrf.mxu2  ;;  %v1088_v59 = vadd.f32 %v3205_v29, %v1022_v37  ;;  %v1285_v13 = vadd.f32 %v1261_v15, %v1219_v53  ;;  %v1025_v37 = vadd.f32 %v3233_v63, %v952_v48 }
 0x1fb   : > { %v1026_v63 = vadd.f32 %v3241_v16, %v955_v61  ;;  %v1027_v16 = vadd.f32 %v3251_v33, %v958_v11  ;;  %v1028_v33 = vadd.f32 %v3259_v0, %v961_v45 }
 0x1fc   : > { %1539 = vmatpush.msrb.mxu1 %v1508_v40  ;;  %1919 = vmatpush.msrb.mxu3 %v1508_v40  ;;  %v1264_v39 = vpop.f32.mrf.mxu1  ;;  %v1154_v41 = vadd.f32 %v3237_v5, %v1088_v59  ;;  %v1351_v19 = vadd.f32 %v1327_v9, %v1285_v13  ;;  %v2112_v40 = vld [vmem:[%s2838_s22 + $0x18] sm:$0xff]  ;;  %v1091_v51 = vadd.f32 %v3235_v3, %v1025_v37  ;;  %v2105_v37 = vld [vmem:[%s3516_s18] ss:$0 sm:$0xff] }
 0x1fd   : > { %v1198_v28 = vpop.f32.mrf.mxu0  ;;  %v1092_v3 = vadd.f32 %v3243_v17, %v1026_v63  ;;  %v1093_v17 = vadd.f32 %v3253_v34, %v1027_v16  ;;  %v1094_v34 = vadd.f32 %v3261_v60, %v1028_v33 }
 0x1fe   : > { %v3245_v18 = vpop.f32.mrf.mxu3  ;;  %1540 = vmatpush.msrb.mxu1 %v1507_v14  ;;  %1920 = vmatpush.msrb.mxu3 %v1507_v14  ;;  %v1220_v23 = vadd.f32 %v1198_v28, %v1154_v41 }
 0x1ff   : > { %v1155_v10 = vadd.f32 %v3245_v18, %v1089_v44 }
 0x200   : > { %1541 = vmatpush.msrb.mxu1 %v1506_v1  ;;  %1921 = vmatpush.msrb.mxu3 %v1506_v1  ;;  %v1286_v5 = vadd.f32 %v1264_v39, %v1220_v23 }
 0x201   : > { %1490 = vmatmul.f32.gmra.mxu0 %v2112_v40 }
 0x202   : > { %v1330_v42 = vpop.f32.mrf.mxu2 }
 0x203   : > { %v1352_v15 = vadd.f32 %v1330_v42, %v1286_v5 }
 0x204   : > { %v1267_v56 = vpop.f32.mrf.mxu1 }
 0x205   : > { %v1201_v38 = vpop.f32.mrf.mxu0 }
 0x206   : > { %v3249_v30 = vpop.f32.mrf.mxu3  ;;  %v1221_v24 = vadd.f32 %v1201_v38, %v1155_v10 }
 0x207   : > { %v1156_v18 = vadd.f32 %v3249_v30, %v1090_v32 }
 0x208   : > { %v1287_v35 = vadd.f32 %v1267_v56, %v1221_v24 }
 0x209   : > { %1493 = vmatmul.f32.gmra.mxu0 %v2113_v20 }
 0x20a   : > { %v1333_v29 = vpop.f32.mrf.mxu2 }
 0x20b   : > { %v1353_v36 = vadd.f32 %v1333_v29, %v1287_v35 }
 0x20c   : > { %v1270_v28 = vpop.f32.mrf.mxu1 }
 0x20d   : > { %v1204_v2 = vpop.f32.mrf.mxu0 }
 0x20e   : > { %v3257_v25 = vpop.f32.mrf.mxu3  ;;  %v1222_v50 = vadd.f32 %v1204_v2, %v1156_v18 }
 0x20f   : > { %v1157_v30 = vadd.f32 %v3257_v25, %v1091_v51  ;;  %v2106_v51 = vld [vmem:[%s3517_s20] ss:$0 sm:$0xff] }
 0x210   : > { %v1288_v59 = vadd.f32 %v1270_v28, %v1222_v50 }
 0x211   : > { %1496 = vmatmul.f32.gmra.mxu0 %v2114_v54 }
 0x212   : > { %v1336_v31 = vpop.f32.mrf.mxu2 }
 0x213   : > { %v1354_v41 = vadd.f32 %v1336_v31, %v1288_v59 }
 0x214   : > { %v1273_v13 = vpop.f32.mrf.mxu1 }
 0x215   : > { %v1207_v39 = vpop.f32.mrf.mxu0 }
 0x216   : > { %v3263_v7 = vpop.f32.mrf.mxu3 }
 0x217   : > { %v1158_v26 = vadd.f32 %v3263_v7, %v1092_v3 }
 0x21a   : > { %v1339_v55 = vpop.f32.mrf.mxu2 }
 0x21c   : > { %v1276_v25 = vpop.f32.mrf.mxu1 }
 0x21d   : > { %v1210_v23 = vpop.f32.mrf.mxu0 }
 0x21e   : > { %v3269_v22 = vpop.f32.mrf.mxu3  ;;  %v1224_v5 = vadd.f32 %v1210_v23, %v1158_v26 }
 0x21f   : > { %v1159_v21 = vadd.f32 %v3269_v22, %v1093_v17 }
 0x220   : > { %v1290_v10 = vadd.f32 %v1276_v25, %v1224_v5 }
 0x225   : > { %v1213_v8 = vpop.f32.mrf.mxu0 }
 0x226   : > { %v3278_v4 = vpop.f32.mrf.mxu3  ;;  %v1225_v20 = vadd.f32 %v1213_v8, %v1159_v21 }
 0x227   : > { %v1160_v49 = vadd.f32 %v3278_v4, %v1094_v34 }
 0x22d   : > { %v1216_v32 = vpop.f32.mrf.mxu0 }
 0x22e   : > { %v1393_v58 = vpop.f32.mrf.mxu3  ;;  %v1226_v35 = vadd.f32 %v1216_v32, %v1160_v49 }
 0x22f   : > { %v1417_v14 = vadd.f32 %v1393_v58, %v1351_v19  ;;  %v1223_v58 = vadd.f32 %v1207_v39, %v1157_v30 }
 0x231   : > { %v1429_v52 = vadd.f32 %v3289_v62, %v1417_v14  ;;  %v1289_v14 = vadd.f32 %v1273_v13, %v1223_v58 }
 0x233   : > { %v1437_v1 = vmax.f32 %v1429_v52, 0.0  ;;  %v1355_v6 = vadd.f32 %v1339_v55, %v1289_v14  ;;  %v1342_v52 = vpop.f32.mrf.mxu2 }
 0x234   : > { %v1356_v7 = vadd.f32 %v1342_v52, %v1290_v10 }
 0x235   : > { %1542 = vmatmul.f32.vlgmr.msrb.gmra.mxu1 %v1437_v1 }
 0x236   : > { %v1396_v9 = vpop.f32.mrf.mxu3 }
 0x237   : > { %v1418_v46 = vadd.f32 %v1396_v9, %v1352_v15 }
 0x239   : > { %v1430_v47 = vadd.f32 %v3289_v62, %v1418_v46  ;;  %v1279_v46 = vpop.f32.mrf.mxu1 }
 0x23b   : > { %v1438_v57 = vmax.f32 %v1430_v47, 0.0  ;;  %v1345_v27 = vpop.f32.mrf.mxu2  ;;  %v1291_v47 = vadd.f32 %v1279_v46, %v1225_v20 }
 0x23d   : > { %1545 = vmatmul.f32.gmra.mxu1 %v1438_v57  ;;  %v1357_v43 = vadd.f32 %v1345_v27, %v1291_v47 }
 0x23e   : > { %v1399_v42 = vpop.f32.mrf.mxu3 }
 0x23f   : > { %v1419_v53 = vadd.f32 %v1399_v42, %v1353_v36 }
 0x241   : > { %v1431_v38 = vadd.f32 %v3289_v62, %v1419_v53  ;;  %v1282_v18 = vpop.f32.mrf.mxu1 }
 0x242   : > { %v1292_v39 = vadd.f32 %v1282_v18, %v1226_v35 }
 0x243   : > { %v1439_v12 = vmax.f32 %v1431_v38, 0.0  ;;  %v1348_v36 = vpop.f32.mrf.mxu2 }
 0x244   : > { %v1358_v42 = vadd.f32 %v1348_v36, %v1292_v39 }
 0x245   : > { %1548 = vmatmul.f32.gmra.mxu1 %v1439_v12 }
 0x246   : > { %v1402_v19 = vpop.f32.mrf.mxu3 }
 0x247   : > { %v1420_v40 = vadd.f32 %v1402_v19, %v1354_v41 }
 0x249   : > { %v1432_v56 = vadd.f32 %v3289_v62, %v1420_v40 }
 0x24b   : > { %v1440_v29 = vmax.f32 %v1432_v56, 0.0 }
 0x24d   : > { %1551 = vmatmul.f32.gmra.mxu1 %v1440_v29 }
 0x24e   : > { %v1405_v44 = vpop.f32.mrf.mxu3 }
 0x24f   : > { %v1421_v1 = vadd.f32 %v1405_v44, %v1355_v6 }
 0x251   : > { %v1433_v2 = vadd.f32 %v3289_v62, %v1421_v1 }
 0x253   : > { %v1441_v15 = vmax.f32 %v1433_v2, 0.0 }
 0x255   : > { %1554 = vmatmul.f32.gmra.mxu1 %v1441_v15 }
 0x256   : > { %v1408_v9 = vpop.f32.mrf.mxu3 }
 0x257   : > { %v1422_v24 = vadd.f32 %v1408_v9, %v1356_v7 }
 0x259   : > { %v1434_v28 = vadd.f32 %v3289_v62, %v1422_v24 }
 0x25b   : > { %v1442_v31 = vmax.f32 %v1434_v28, 0.0 }
 0x25d   : > { %1557 = vmatmul.f32.gmra.mxu1 %v1442_v31 }
 0x25e   : > { %v1411_v22 = vpop.f32.mrf.mxu3 }
 0x25f   : > { %v1423_v57 = vadd.f32 %v1411_v22, %v1357_v43 }
 0x261   : > { %v1435_v48 = vadd.f32 %v3289_v62, %v1423_v57 }
 0x263   : > { %v1443_v0 = vmax.f32 %v1435_v48, 0.0 }
 0x265   : > { %1560 = vmatmul.f32.vlgmr.msrb.gmra.mxu3 %v1443_v0 }
 0x266   : > { %v1414_v60 = vpop.f32.mrf.mxu3  ;;  %v1482_v4 = vpop.f32.mrf.mxu0 }
 0x267   : > { %v1424_v54 = vadd.f32 %v1414_v60, %v1358_v42  ;;  %v1483_v59 = vadd.f32 %v2105_v37, %v1482_v4 }
 0x269   : > { %v1436_v50 = vadd.f32 %v3289_v62, %v1424_v54 }
 0x26a   : > { %v1500_v9 = vpop.f32.mrf.mxu2 }
 0x26b   : > { %v1444_v53 = vmax.f32 %v1436_v50, 0.0  ;;  %v1501_v20 = vadd.f32 %v2105_v37, %v1500_v9 }
 0x26d   : > { %1563 = vmatmul.f32.gmra.mxu3 %v1444_v53 }
 0x26e   : > { %v1485_v38 = vpop.f32.mrf.mxu0 }
 0x26f   : > { %v1486_v62 = vadd.f32 %v2105_v37, %v1485_v38 }
 0x272   : > { %v1503_v33 = vpop.f32.mrf.mxu2 }
 0x273   : > { %v1504_v34 = vadd.f32 %v2105_v37, %v1503_v33 }
 0x276   : > { %v1488_v30 = vpop.f32.mrf.mxu0 }
 0x277   : > { %v1489_v23 = vadd.f32 %v2105_v37, %v1488_v30 }
 0x27e   : > { %v1491_v56 = vpop.f32.mrf.mxu0 }
 0x27f   : > { %v1492_v11 = vadd.f32 %v2105_v37, %v1491_v56 }
 0x286   : > { %v1494_v25 = vpop.f32.mrf.mxu0 }
 0x287   : > { %v1495_v5 = vadd.f32 %v2105_v37, %v1494_v25 }
 0x28e   : > { %v1497_v8 = vpop.f32.mrf.mxu0 }
 0x28f   : > { %v1498_v10 = vadd.f32 %v2105_v37, %v1497_v8 }
 0x2b2   : > { %v1543_v13 = vpop.f32.mrf.mxu1 }
 0x2b3   : > { %v1544_v12 = vadd.f32 %v2106_v51, %v1543_v13 }
 0x2b5   : > { %v1567_v55 = vadd.f32 %v1544_v12, %v1483_v59 }
 0x2b7   : > { %v1575_v61 = vmax.f32 %v1567_v55, 0.0 }
 0x2b9   : > { %1583 = vst [vmem:[%s3338_s25] sm:$0xff] %v1575_v61 }
 0x2ba   : > { %v1546_v41 = vpop.f32.mrf.mxu1 }
 0x2bb   : > { %v1547_v19 = vadd.f32 %v2106_v51, %v1546_v41 }
 0x2bd   : > { %v1568_v58 = vadd.f32 %v1547_v19, %v1486_v62 }
 0x2bf   : > { %v1576_v40 = vmax.f32 %v1568_v58, 0.0 }
 0x2c1   : > { %1584 = vst [vmem:[%s3338_s25 + $0x8] sm:$0xff] %v1576_v40 }
 0x2c2   : > { %v1549_v63 = vpop.f32.mrf.mxu1 }
 0x2c3   : > { %v1550_v3 = vadd.f32 %v2106_v51, %v1549_v63 }
 0x2c5   : > { %v1569_v14 = vadd.f32 %v1550_v3, %v1489_v23 }
 0x2c7   : > { %v1577_v29 = vmax.f32 %v1569_v14, 0.0 }
 0x2c9   : > { %1585 = vst [vmem:[%s3338_s25 + $0x10] sm:$0xff] %v1577_v29 }
 0x2ca   : > { %v1552_v26 = vpop.f32.mrf.mxu1 }
 0x2cb   : > { %v1553_v6 = vadd.f32 %v2106_v51, %v1552_v26 }
 0x2cd   : > { %v1570_v52 = vadd.f32 %v1553_v6, %v1492_v11 }
 0x2cf   : > { %v1578_v44 = vmax.f32 %v1570_v52, 0.0 }
 0x2d1   : > { %1586 = vst [vmem:[%s3338_s25 + $0x18] sm:$0xff] %v1578_v44 }
 0x2d2   : > { %v1555_v1 = vpop.f32.mrf.mxu1 }
 0x2d3   : > { %v1556_v16 = vadd.f32 %v2106_v51, %v1555_v1 }
 0x2d5   : > { %v1571_v2 = vadd.f32 %v1556_v16, %v1495_v5 }
 0x2d7   : > { %v1579_v17 = vmax.f32 %v1571_v2, 0.0 }
 0x2d9   : > { %1587 = vst [vmem:[%s3338_s25 + $0x20] sm:$0xff] %v1579_v17 }
 0x2da   : > { %v1558_v15 = vpop.f32.mrf.mxu1 }
 0x2db   : > { %v1559_v45 = vadd.f32 %v2106_v51, %v1558_v15 }
 0x2dd   : > { %v1572_v21 = vadd.f32 %v1559_v45, %v1498_v10 }
 0x2df   : > { %v1580_v7 = vmax.f32 %v1572_v21, 0.0 }
 0x2e1   : > { %1588 = vst [vmem:[%s3338_s25 + $0x28] sm:$0xff] %v1580_v7 }
 0x2e8   : > { %v1561_v24 = vpop.f32.mrf.mxu3 }
 0x2e9   : > { %v1562_v46 = vadd.f32 %v2106_v51, %v1561_v24 }
 0x2eb   : > { %v1573_v27 = vadd.f32 %v1562_v46, %v1501_v20 }
 0x2ed   : > { %v1581_v28 = vmax.f32 %v1573_v27, 0.0 }
 0x2ef   : > { %1589 = vst [vmem:[%s3338_s25 + $0x30] sm:$0xff] %v1581_v28 }
 0x2f0   : > { %v1564_v47 = vpop.f32.mrf.mxu3 }
 0x2f1   : > { %v1565_v31 = vadd.f32 %v2106_v51, %v1564_v47 }
 0x2f3   : > { %v1574_v32 = vadd.f32 %v1565_v31, %v1504_v34 }
 0x2f5   : > { %v1582_v49 = vmax.f32 %v1574_v32, 0.0 }
 0x2f7   : > { %1590 = vst [vmem:[%s3338_s25 + $0x38] sm:$0xff] %v1582_v49 }
 0x2f8   : > { %2352 = shalt.err (!%p2349_p10)
}
 0x2f9   : > { %s2495_s7 = smov 128   ;;  %s2496_s17 = smov 8  }
 0x2fa   : > { %1944 = dma.vmem_to_hbm [thread:$0]  (%p2768_p5), %s1607_s11, 1024, %s1609_s12, %s1592_s2, %s2495_s7, %s2495_s7, %s2496_s17  }
 0x2fb PF: > { %p1982_p11 = scmp.ge.s32.totalorder %s2487_s30, 2  ;;  %s1623_s19 = sand.u32 1, %s2459_s23  }
 0x2fc   : > { %s1624_s20 = scalar_lea.sflag [#allocation4], %s1623_s19 }
 0x2fd   : > { %p1970_p7 = pnand %p1982_p11, %p2772_p12 }
 0x2ff   : > { %p1971_p2 = pneg %p1970_p7 }
 0x301   : > { %2430 = dma.done.wait (%p1971_p2), %s1624_s20, 1024  }
 0x302   : > { %2432 = vsyncadd (%p1971_p2), %s1624_s20, 4294966272  ;;  %s32_s30 = sadd.s32 1, %s2487_s30   ;;  %s3521_s17 = sld [smem:[#allocation22_spill]] }
 0x303   : > { %p3370_p1 = scmp.ge.s32.totalorder %s32_s30, 10   ;;  %s3522_s18 = sld [smem:[#allocation23_spill]] }
 0x304   : > { %s3523_s20 = sld [smem:[#allocation24_spill]]  ;;  %s3532_s19 = smov %s3553_s16 }
 0x305   : > { %s3524_s21 = sld [smem:[#allocation25_spill]]  ;;  %s3533_s23 = smov %s2463_s24 }
 0x306   : > { %s3525_s22 = sld [smem:[#allocation36_spill]]  ;;  %s3536_s26 = smov %s2479_s28 }
 0x307   : > { %s3526_s10 = sld [smem:[#allocation26_spill]] }
 0x308   : > { %s3527_s0 = sld [smem:[#allocation37_spill]] }
 0x309   : > { %s3528_s27 = sld [smem:[#allocation29_spill]] }
 0x30a   : > { %s3529_s5 = sld [smem:[#allocation31_spill]] }
 0x30b   : > { %s3530_s29 = sld [smem:[#allocation32_spill]] }
 0x30c   :  { %31 = sbr.rel (!%p3370_p1) target bundleno = 27 (0x1b), region = 157 }
 0x30d   : > { %s3534_s24 = smov %s3526_s10 }
 0x30e   : > { %s3535_s25 = smov %s3527_s0 }
 0x310   : > { %s3537_s28 = smov %s3529_s5 }
 0x311   :  { %1630 = vsyncpa [#allocation3], 1 }
 0x312   :  { %1632 = vsyncpa [#allocation3 + $0x1], 1 }
 0x313   :  { %1633 = vsyncpa [#allocation6], 1 }
 0x314   :  { %1635 = vsyncpa [#allocation6 + $0x1], 1 }
 0x315   :  { %1636 = vsyncpa [#allocation9], 1 }
 0x316   :  { %1637 = vsyncpa [#allocation12], 1 }
 0x317   :  { %1638 = vsyncpa [#allocation4], 1 }
 0x318   :  { %1640 = vsyncpa [#allocation4 + $0x1], 1 }

</bundles_post_ra>
